<compile_context>
chip_gen: v7x
topology: tpu7x:2x2x1
jax: 0.10.0
libtpu: 0.0.40
codegen_flags: <defaults>
</compile_context>

<pallas_src>
import jax
import jax.numpy as jnp
from jax.experimental import pallas as pl
from jax.experimental.pallas import tpu as pltpu


def read_unit_kernel(mem_ref, ctrl_ref, kb_ref, kbp_ref,
                     w_mem_ref, b_mem_ref,
                     w_cat1_t_ref, w_cat2_t_ref, w_attn_row_ref,
                     out_ref):
    # Per-step tile shapes:
    #   mem_ref, ctrl_ref : [BB, dim]          (f32)
    #   kb_ref, kbp_ref   : [BB, dim, HW]      (bf16 or f32, native PyTorch layout)
    #   out_ref           : [BB, 1, dim]       (f32)
    kb = kb_ref[...].astype(jnp.float32)            # [BB, dim, HW]
    kbp = kbp_ref[...].astype(jnp.float32)          # [BB, dim, HW]

    # --- tiny per-batch vectors (everything the concat/attn layers reduce to) ---
    mp = jnp.dot(mem_ref[...], w_mem_ref[...],
                 preferred_element_type=jnp.float32) + b_mem_ref[...]       # [BB, dim]
    u = ctrl_ref[...] * w_attn_row_ref[...]                                 # [BB, dim]
    v1 = mp * jnp.dot(u, w_cat1_t_ref[...],
                      preferred_element_type=jnp.float32)                   # [BB, dim]
    v2 = jnp.dot(u, w_cat2_t_ref[...],
                 preferred_element_type=jnp.float32)                        # [BB, dim]

    # --- attention logits, lane-major over HW (constant bias terms cancel in softmax)
    rai = (jnp.einsum('bqd,bdh->bqh', v1[:, None, :], kbp,
                      preferred_element_type=jnp.float32)
           + jnp.einsum('bqd,bdh->bqh', v2[:, None, :], kb,
                        preferred_element_type=jnp.float32))                # [BB, 1, HW]

    # --- softmax over HW (lane reductions), keep the weights unnormalized
    m = jnp.max(rai, axis=-1, keepdims=True)        # [BB, 1, 1]
    e = jnp.exp(rai - m)                            # [BB, 1, HW]
    l = jnp.sum(e, axis=-1, keepdims=True)          # [BB, 1, 1]

    # --- read vector: MXU contraction over HW, normalize once after the read
    read = jnp.einsum('bqh,bdh->bqd', e, kb,
                      preferred_element_type=jnp.float32)                   # [BB, 1, dim]
    out_ref[...] = read * pl.reciprocal(l, approx=True)


def _pick_block_b(B, dim, HW, itemsize, vmem_budget_bytes=8 * 1024 * 1024):
    """Largest divisor of B that keeps grid >= 2 (v7x megacore + pipeline overlap)
    while the two double-buffered kb/kb_proj streams fit a conservative VMEM budget."""
    best = 1
    for bb in range(1, B + 1):
        if B % bb:
            continue
        resident = 2 * 2 * bb * dim * HW * itemsize   # 2 arrays x 2 pipeline buffers
        if resident > vmem_budget_bytes:
            continue
        if (B // bb) >= 2 or B == 1:
            best = bb
    return best


def read_unit_pallas(memory, ctrl, knowledge_base, kb_proj, params, *, block_b=None):
    """memory/ctrl: [B, dim] f32; knowledge_base/kb_proj: [B, dim, HW] in their
    HBM storage dtype (bf16 recommended - they are the only large streams)."""
    B, dim = memory.shape
    HW = knowledge_base.shape[2]
    w_mem, b_mem, w_cat1, w_cat2, b_cat, w_attn, b_attn = params
    del b_cat, b_attn  # cancel in softmax after the rank-1 fusion (exact)

    # Tiny one-time parameter re-layouts (dim*dim at most); the big [B, dim, HW]
    # tensors are consumed in their native layout with no wrapper transpose/cast.
    w_cat1_t = w_cat1.T                      # [out_e, in_d] -> used as u @ W1^T
    w_cat2_t = w_cat2.T
    w_attn_row = w_attn.reshape(1, dim)

    if block_b is None:
        block_b = _pick_block_b(B, dim, HW, jnp.dtype(knowledge_base.dtype).itemsize)
    bb = min(block_b, B)
    assert B % bb == 0, "batch must be divisible by the batch tile"
    grid = (B // bb,)

    def const_spec(shape):
        n = len(shape)
        return pl.BlockSpec(shape, lambda i, n=n: (0,) * n)

    out3 = pl.pallas_call(
        read_unit_kernel,
        out_shape=jax.ShapeDtypeStruct((B, 1, dim), jnp.float32),
        grid_spec=pltpu.PrefetchScalarGridSpec(
            num_scalar_prefetch=0,
            grid=grid,
            in_specs=[
                pl.BlockSpec((bb, dim), lambda i: (i, 0)),          # memory
                pl.BlockSpec((bb, dim), lambda i: (i, 0)),          # ctrl
                pl.BlockSpec((bb, dim, HW), lambda i: (i, 0, 0)),   # knowledge base
                pl.BlockSpec((bb, dim, HW), lambda i: (i, 0, 0)),   # kb projection
                const_spec(w_mem.shape),
                const_spec(b_mem.shape),
                const_spec(w_cat1_t.shape),
                const_spec(w_cat2_t.shape),
                const_spec(w_attn_row.shape),
            ],
            out_specs=pl.BlockSpec((bb, 1, dim), lambda i: (i, 0, 0)),
        ),
        compiler_params=pltpu.CompilerParams(
            dimension_semantics=("parallel",)),
    )(memory, ctrl, knowledge_base, kb_proj,
      w_mem, b_mem, w_cat1_t, w_cat2_t, w_attn_row)

    # free metadata reshape of the tiny [B, 1, dim] output
    return out3.reshape(B, dim)


def read_unit_ref(memory, ctrl, knowledge_base, kb_proj, params):
    """Pure-JAX reference mirroring the PyTorch forward exactly (all f32)."""
    w_mem, b_mem, w_cat1, w_cat2, b_cat, w_attn, b_attn = params
    mp = memory @ w_mem + b_mem                               # [B, dim]
    I = mp[:, :, None] * kb_proj                              # [B, dim, HW]
    concat_in = jnp.concatenate([I, knowledge_base], axis=1)  # [B, 2*dim, HW]
    concat_in = jnp.transpose(concat_in, (0, 2, 1))           # [B, HW, 2*dim]
    w_cat = jnp.concatenate([w_cat1, w_cat2], axis=0)         # [2*dim, dim]
    cat = concat_in @ w_cat + b_cat                           # [B, HW, dim]
    rai = (cat * ctrl[:, None, :]) @ w_attn + b_attn          # [B, HW, 1]
    rai = rai[..., 0]                                         # [B, HW]
    rvi = jax.nn.softmax(rai, axis=1)[:, None, :]             # [B, 1, HW]
    return jnp.sum(rvi * knowledge_base, axis=2)              # [B, dim]


if __name__ == "__main__":
    B, dim, H, W = 16, 32, 8, 8
    HW = H * W

    key = jax.random.PRNGKey(0)
    ks = jax.random.split(key, 12)

    # inputs (last memory / control state, knowledge base and its projection)
    memory = jax.random.normal(ks[0], (B, dim), jnp.float32)
    ctrl = jax.random.normal(ks[1], (B, dim), jnp.float32)
    knowledge_base = jax.random.normal(ks[2], (B, dim, HW), jnp.float32)
    kb_proj = jax.random.normal(ks[3], (B, dim, HW), jnp.float32)

    # deterministic synthetic parameters (stored in [in, out] layout)
    scale = 0.1
    w_mem = scale * jax.random.normal(ks[4], (dim, dim), jnp.float32)
    b_mem = scale * jax.random.normal(ks[5], (1, dim), jnp.float32)
    w_cat1 = scale * jax.random.normal(ks[6], (dim, dim), jnp.float32)   # concat W, first half (I part)
    w_cat2 = scale * jax.random.normal(ks[7], (dim, dim), jnp.float32)   # concat W, second half (kb part)
    b_cat = scale * jax.random.normal(ks[8], (1, dim), jnp.float32)
    w_attn = scale * jax.random.normal(ks[9], (dim, 1), jnp.float32)
    b_attn = scale * jax.random.normal(ks[10], (1, 1), jnp.float32)
    params = (w_mem, b_mem, w_cat1, w_cat2, b_cat, w_attn, b_attn)

    ref = read_unit_ref(memory, ctrl, knowledge_base, kb_proj, params)

    # 1) f32 streams: checks that the rank-1 fusion is exact (up to the approx
    #    reciprocal in the softmax normalization).
    out_f32 = read_unit_pallas(memory, ctrl, knowledge_base, kb_proj, params)
    out_f32 = jax.block_until_ready(out_f32)
    assert out_f32.shape == (B, dim)
    err_f32 = jnp.max(jnp.abs(out_f32 - ref))
    assert jnp.allclose(out_f32, ref, atol=1e-2, rtol=1e-2), f"f32 max abs err {err_f32}"

    # 2) bf16 HBM streams for the two large operands (the intended production
    #    config: kb / kb_proj are computed once per image and reused across all
    #    MAC reasoning steps, so the one-time cast amortizes).
    kb_bf16 = knowledge_base.astype(jnp.bfloat16)
    kbp_bf16 = kb_proj.astype(jnp.bfloat16)
    out_bf16 = read_unit_pallas(memory, ctrl, kb_bf16, kbp_bf16, params)
    out_bf16 = jax.block_until_ready(out_bf16)
    assert out_bf16.shape == (B, dim)
    err_bf16 = jnp.max(jnp.abs(out_bf16 - ref))
    assert jnp.allclose(out_bf16, ref, atol=3e-2, rtol=3e-2), f"bf16 max abs err {err_bf16}"

    print("KERNEL_OK")
</pallas_src>

<mosaic_0001>
module attributes {stable_mosaic.version = 11 : i64} {
  func.func @read_unit_kernel(%arg0: i32, %arg1: memref<8x32xf32, #tpu.memory_space<vmem>>, %arg2: memref<8x32xf32, #tpu.memory_space<vmem>>, %arg3: memref<8x32x64xf32, #tpu.memory_space<vmem>>, %arg4: memref<8x32x64xf32, #tpu.memory_space<vmem>>, %arg5: memref<32x32xf32, #tpu.memory_space<vmem>>, %arg6: memref<1x32xf32, #tpu.memory_space<vmem>>, %arg7: memref<32x32xf32, #tpu.memory_space<vmem>>, %arg8: memref<32x32xf32, #tpu.memory_space<vmem>>, %arg9: memref<1x32xf32, #tpu.memory_space<vmem>>, %arg10: memref<8x1x32xf32, #tpu.memory_space<vmem>>) attributes {dimension_semantics = [#tpu.dimension_semantics<parallel>], iteration_bounds = array<i64: 2>, scalar_prefetch = 0 : i64, scratch_operands = 0 : i64, tpu.core_type = #tpu.core_type<tc>, window_params = [{transform_indices = @transform_0, window_bounds = array<i64: 8, 32>}, {transform_indices = @transform_1, window_bounds = array<i64: 8, 32>}, {transform_indices = @transform_2, window_bounds = array<i64: 8, 32, 64>}, {transform_indices = @transform_3, window_bounds = array<i64: 8, 32, 64>}, {pipeline_mode = #tpu.pipeline_mode<synchronous>, transform_indices = @transform_4, window_bounds = array<i64: 32, 32>}, {pipeline_mode = #tpu.pipeline_mode<synchronous>, transform_indices = @transform_5, window_bounds = array<i64: 1, 32>}, {pipeline_mode = #tpu.pipeline_mode<synchronous>, transform_indices = @transform_6, window_bounds = array<i64: 32, 32>}, {pipeline_mode = #tpu.pipeline_mode<synchronous>, transform_indices = @transform_7, window_bounds = array<i64: 32, 32>}, {pipeline_mode = #tpu.pipeline_mode<synchronous>, transform_indices = @transform_8, window_bounds = array<i64: 1, 32>}, {transform_indices = @transform_9, window_bounds = array<i64: 8, 1, 32>}]} {
    %c0 = arith.constant 0 : index
    %c0_0 = arith.constant 0 : index
    %c0_1 = arith.constant 0 : index
    %0 = vector.load %arg3[%c0, %c0_0, %c0_1] : memref<8x32x64xf32, #tpu.memory_space<vmem>>, vector<8x32x64xf32>
    %c0_2 = arith.constant 0 : index
    %c0_3 = arith.constant 0 : index
    %c0_4 = arith.constant 0 : index
    %1 = vector.load %arg4[%c0_2, %c0_3, %c0_4] : memref<8x32x64xf32, #tpu.memory_space<vmem>>, vector<8x32x64xf32>
    %c0_5 = arith.constant 0 : index
    %c0_6 = arith.constant 0 : index
    %2 = vector.load %arg1[%c0_5, %c0_6] : memref<8x32xf32, #tpu.memory_space<vmem>>, vector<8x32xf32>
    %c0_7 = arith.constant 0 : index
    %c0_8 = arith.constant 0 : index
    %3 = vector.load %arg5[%c0_7, %c0_8] : memref<32x32xf32, #tpu.memory_space<vmem>>, vector<32x32xf32>
    %cst = arith.constant dense<0.000000e+00> : vector<8x32xf32>
    %4 = tpu.matmul %2, %3, %cst {dimension_numbers = #tpu.dot_dimension_numbers<[1], [0], [0], [1], [0, 0, 1, 1], [], []>} : vector<8x32xf32>, vector<32x32xf32>, vector<8x32xf32> -> vector<8x32xf32>
    %c0_9 = arith.constant 0 : index
    %c0_10 = arith.constant 0 : index
    %5 = vector.load %arg6[%c0_9, %c0_10] : memref<1x32xf32, #tpu.memory_space<vmem>>, vector<1x32xf32>
    %6 = vector.broadcast %5 : vector<1x32xf32> to vector<8x32xf32>
    %7 = arith.addf %4, %6 : vector<8x32xf32>
    %c0_11 = arith.constant 0 : index
    %c0_12 = arith.constant 0 : index
    %8 = vector.load %arg2[%c0_11, %c0_12] : memref<8x32xf32, #tpu.memory_space<vmem>>, vector<8x32xf32>
    %c0_13 = arith.constant 0 : index
    %c0_14 = arith.constant 0 : index
    %9 = vector.load %arg9[%c0_13, %c0_14] : memref<1x32xf32, #tpu.memory_space<vmem>>, vector<1x32xf32>
    %10 = vector.broadcast %9 : vector<1x32xf32> to vector<8x32xf32>
    %11 = arith.mulf %8, %10 : vector<8x32xf32>
    %c0_15 = arith.constant 0 : index
    %c0_16 = arith.constant 0 : index
    %12 = vector.load %arg7[%c0_15, %c0_16] : memref<32x32xf32, #tpu.memory_space<vmem>>, vector<32x32xf32>
    %cst_17 = arith.constant dense<0.000000e+00> : vector<8x32xf32>
    %13 = tpu.matmul %11, %12, %cst_17 {dimension_numbers = #tpu.dot_dimension_numbers<[1], [0], [0], [1], [0, 0, 1, 1], [], []>} : vector<8x32xf32>, vector<32x32xf32>, vector<8x32xf32> -> vector<8x32xf32>
    %14 = arith.mulf %7, %13 : vector<8x32xf32>
    %c0_18 = arith.constant 0 : index
    %c0_19 = arith.constant 0 : index
    %15 = vector.load %arg8[%c0_18, %c0_19] : memref<32x32xf32, #tpu.memory_space<vmem>>, vector<32x32xf32>
    %cst_20 = arith.constant dense<0.000000e+00> : vector<8x32xf32>
    %16 = tpu.matmul %11, %15, %cst_20 {dimension_numbers = #tpu.dot_dimension_numbers<[1], [0], [0], [1], [0, 0, 1, 1], [], []>} : vector<8x32xf32>, vector<32x32xf32>, vector<8x32xf32> -> vector<8x32xf32>
    %17 = vector.shape_cast %14 : vector<8x32xf32> to vector<8x1x32xf32>
    "tpu.trace_start"() <{level = 10 : i32, message = "bqd,bdh->bqh"}> : () -> ()
    %cst_21 = arith.constant dense<0.000000e+00> : vector<8x1x64xf32>
    %18 = tpu.matmul %17, %1, %cst_21 {dimension_numbers = #tpu.dot_dimension_numbers<[2], [1], [1], [2], [0, 0, 0, 1, 1, 2], [0], [0]>} : vector<8x1x32xf32>, vector<8x32x64xf32>, vector<8x1x64xf32> -> vector<8x1x64xf32>
    "tpu.trace_stop"() : () -> ()
    %19 = vector.shape_cast %16 : vector<8x32xf32> to vector<8x1x32xf32>
    "tpu.trace_start"() <{level = 10 : i32, message = "bqd,bdh->bqh"}> : () -> ()
    %cst_22 = arith.constant dense<0.000000e+00> : vector<8x1x64xf32>
    %20 = tpu.matmul %19, %0, %cst_22 {dimension_numbers = #tpu.dot_dimension_numbers<[2], [1], [1], [2], [0, 0, 0, 1, 1, 2], [0], [0]>} : vector<8x1x32xf32>, vector<8x32x64xf32>, vector<8x1x64xf32> -> vector<8x1x64xf32>
    "tpu.trace_stop"() : () -> ()
    %21 = arith.addf %18, %20 : vector<8x1x64xf32>
    %cst_23 = arith.constant dense<0xFF800000> : vector<8x1xf32>
    %22 = vector.multi_reduction <maximumf>, %21, %cst_23 [2] : vector<8x1x64xf32> to vector<8x1xf32>
    %23 = vector.shape_cast %22 : vector<8x1xf32> to vector<8x1x1xf32>
    %24 = vector.broadcast %23 : vector<8x1x1xf32> to vector<8x1x64xf32>
    %25 = arith.subf %21, %24 : vector<8x1x64xf32>
    %26 = math.exp %25 : vector<8x1x64xf32>
    %cst_24 = arith.constant dense<0.000000e+00> : vector<8x1xf32>
    %27 = vector.multi_reduction <add>, %26, %cst_24 [2] : vector<8x1x64xf32> to vector<8x1xf32>
    %28 = vector.shape_cast %27 : vector<8x1xf32> to vector<8x1x1xf32>
    "tpu.trace_start"() <{level = 10 : i32, message = "bqh,bdh->bqd"}> : () -> ()
    %cst_25 = arith.constant dense<0.000000e+00> : vector<8x1x32xf32>
    %29 = tpu.matmul %26, %0, %cst_25 {dimension_numbers = #tpu.dot_dimension_numbers<[2], [2], [1], [1], [0, 0, 0, 1, 1, 1], [0], [0]>} : vector<8x1x64xf32>, vector<8x32x64xf32>, vector<8x1x32xf32> -> vector<8x1x32xf32>
    "tpu.trace_stop"() : () -> ()
    %30 = tpu.reciprocal %28 {approx = true} : vector<8x1x1xf32> -> vector<8x1x1xf32>
    %31 = vector.broadcast %30 : vector<8x1x1xf32> to vector<8x1x32xf32>
    %32 = arith.mulf %29, %31 : vector<8x1x32xf32>
    %c0_26 = arith.constant 0 : index
    %c0_27 = arith.constant 0 : index
    %c0_28 = arith.constant 0 : index
    %33 = vector.load %arg10[%c0_26, %c0_27, %c0_28] : memref<8x1x32xf32, #tpu.memory_space<vmem>>, vector<8x1x32xf32>
    tpu.vector_store %arg10[%c0_26, %c0_27, %c0_28], %32 {strides = array<i32>} : memref<8x1x32xf32, #tpu.memory_space<vmem>>, vector<8x1x32xf32>,
    return
  }
  func.func @transform_0(%arg0: i32) -> (i32, i32) {
    %c0_i32 = arith.constant 0 : i32
    %c0_i32_0 = arith.constant 0 : i32
    return %arg0, %c0_i32 : i32, i32
  }
  func.func @transform_1(%arg0: i32) -> (i32, i32) {
    %c0_i32 = arith.constant 0 : i32
    %c0_i32_0 = arith.constant 0 : i32
    return %arg0, %c0_i32 : i32, i32
  }
  func.func @transform_2(%arg0: i32) -> (i32, i32, i32) {
    %c0_i32 = arith.constant 0 : i32
    %c0_i32_0 = arith.constant 0 : i32
    %c0_i32_1 = arith.constant 0 : i32
    return %arg0, %c0_i32, %c0_i32_0 : i32, i32, i32
  }
  func.func @transform_3(%arg0: i32) -> (i32, i32, i32) {
    %c0_i32 = arith.constant 0 : i32
    %c0_i32_0 = arith.constant 0 : i32
    %c0_i32_1 = arith.constant 0 : i32
    return %arg0, %c0_i32, %c0_i32_0 : i32, i32, i32
  }
  func.func @transform_4(%arg0: i32) -> (i32, i32) {
    %c0_i32 = arith.constant 0 : i32
    %c0_i32_0 = arith.constant 0 : i32
    %c0_i32_1 = arith.constant 0 : i32
    return %c0_i32, %c0_i32_0 : i32, i32
  }
  func.func @transform_5(%arg0: i32) -> (i32, i32) {
    %c0_i32 = arith.constant 0 : i32
    %c0_i32_0 = arith.constant 0 : i32
    %c0_i32_1 = arith.constant 0 : i32
    return %c0_i32, %c0_i32_0 : i32, i32
  }
  func.func @transform_6(%arg0: i32) -> (i32, i32) {
    %c0_i32 = arith.constant 0 : i32
    %c0_i32_0 = arith.constant 0 : i32
    %c0_i32_1 = arith.constant 0 : i32
    return %c0_i32, %c0_i32_0 : i32, i32
  }
  func.func @transform_7(%arg0: i32) -> (i32, i32) {
    %c0_i32 = arith.constant 0 : i32
    %c0_i32_0 = arith.constant 0 : i32
    %c0_i32_1 = arith.constant 0 : i32
    return %c0_i32, %c0_i32_0 : i32, i32
  }
  func.func @transform_8(%arg0: i32) -> (i32, i32) {
    %c0_i32 = arith.constant 0 : i32
    %c0_i32_0 = arith.constant 0 : i32
    %c0_i32_1 = arith.constant 0 : i32
    return %c0_i32, %c0_i32_0 : i32, i32
  }
  func.func @transform_9(%arg0: i32) -> (i32, i32, i32) {
    %c0_i32 = arith.constant 0 : i32
    %c0_i32_0 = arith.constant 0 : i32
    %c0_i32_1 = arith.constant 0 : i32
    return %arg0, %c0_i32, %c0_i32_0 : i32, i32, i32
  }
}

</mosaic_0001>

<bundles_post_ra>
// kernel: tpu_custom_call.1
= control target key start
LH: loop header
LB: loop body
LE: loop exit
PB: predicated region body
PF: predicated region fallthrough
CT: control target
= control target key end

     0   :  { %s5015_s0 = inlined_call_operand.hbm [shape: f32[16,32], index: 0, kind: input, shape index: {}]   ;;  %s5016_s1 = inlined_call_operand.hbm [shape: f32[16,32], index: 1, kind: input, shape index: {}]   ;;  %s5017_s2 = inlined_call_operand.hbm [shape: f32[16,32,64], index: 2, kind: input, shape index: {}]   ;;  %s5018_s3 = inlined_call_operand.hbm [shape: f32[16,32,64], index: 3, kind: input, shape index: {}]   ;;  %s5019_s4 = inlined_call_operand.hbm [shape: f32[32,32], index: 4, kind: input, shape index: {}]   ;;  %s5020_s5 = inlined_call_operand.vmem [shape: f32[1,32], index: 5, kind: input, shape index: {}]   ;;  %s5021_s6 = inlined_call_operand.hbm [shape: f32[32,32], index: 6, kind: input, shape index: {}]   ;;  %s5022_s7 = inlined_call_operand.hbm [shape: f32[32,32], index: 7, kind: input, shape index: {}]   ;;  %s5023_s8 = inlined_call_operand.vmem [shape: f32[1,32], index: 8, kind: input, shape index: {}]   ;;  %s5024_s9 = inlined_call_operand.hbm [shape: f32[16,1,32], index: 9, kind: output, shape index: {}]  }
   0x1   :  { %5049 = sst [smem:[#allocation27_spill]] %s5016_s1 }
   0x2   :  { %5050 = sst [smem:[#allocation28_spill]] %s5019_s4 }
   0x3   :  { %5051 = sst [smem:[#allocation29_spill]] %s5020_s5 }
   0x4   :  { %5052 = sst [smem:[#allocation30_spill]] %s5021_s6 }
   0x5   :  { %5053 = sst [smem:[#allocation31_spill]] %s5024_s9 }
   0x6   :  { %14 = vsyncpa [#allocation3], 0 }
   0x7   :  { %16 = vsyncpa [#allocation3 + $0x1], 0 }
   0x8   :  { %17 = vsyncpa [#allocation6], 0 }
   0x9   :  { %19 = vsyncpa [#allocation6 + $0x1], 0 }
   0xa   :  { %20 = vsyncpa [#allocation9], 0 }
   0xb   :  { %22 = vsyncpa [#allocation9 + $0x1], 0 }
   0xc   :  { %23 = vsyncpa [#allocation12], 0 }
   0xd   :  { %24 = vsyncpa [#allocation4], 0 }
   0xe   :  { %26 = vsyncpa [#allocation4 + $0x1], 0  ;;  %s4243_s30 = smov 0   ;;  %s4245_s10 = smov 0  }
   0xf   :  { %s4247_s11 = smov 0   ;;  %s4249_s12 = smov 0  }
  0x10 LB: > { %5054 = sst [smem:[#allocation21_spill]] %s4163_s30  ;;  %s4264_s13 = sadd.s32 4294967295, %s4175_s12   ;;  %s4175_s12 = sphi %s4249_s12, %s5098_s12   ;;  %s4171_s11 = sphi %s4247_s11, %s5100_s11   ;;  %s4167_s10 = sphi %s4245_s10, %s5102_s10   ;;  %s4163_s30 = sphi %s4243_s30, %s5101_s30  }
  0x11   : > { %5055 = sst [smem:[#allocation22_spill]] %s4171_s11  ;;  %s3033_s14 = sadd.s32 4294967294, %s4175_s12  }
  0x12   : > { %p52_p0 = scmp.ne.s32.totalorder %s4167_s10, %s4163_s30  ;;  %p5025_p1 = scmp.eq.s32.totalorder %s4264_s13, 0 }
  0x13   : > { %p265_p3 = scmp.eq.s32.totalorder %s3033_s14, 1  ;;  %p3034_p5 = scmp.ge.s32.totalorder %s4175_s12, 1 }
  0x14   : > { %p4273_p4 = por %p5025_p1, %p52_p0  ;;  %p272_p7 = scmp.lt.s32.totalorder %s4175_s12, 3 }
  0x15   : > { %p4278_p6 = por %p265_p3, %p52_p0  ;;  %s4177_s18 = smov [#allocation10]  }
  0x16   : > { %s5056_s15 = scalar_select %p4273_p4, 1, 0 }
  0x17   : > { %s5057_s16 = scalar_select %p4278_p6, 1, 0 }
  0x18   : > { %p4283_p8 = pnand %p3034_p5, %p272_p7  ;;  %s284_s19 = sshll.u32 %s4177_s18, 4  ;;  %s4287_s19 = int_to_ptr.vmem [resolvable:$true] %s284_s19 }
  0x19   : > { %5058 = sst [smem:[#allocation23_spill]] %s5057_s16  ;;  %s4178_s21 = smov [#allocation11]  }
  0x1a   : > { %s5059_s17 = scalar_select %p4283_p8, 1, 0 }
  0x1b   : > { %p3779_p9 = pneg %p4283_p8  ;;  %s300_s22 = sshll.u32 %s4178_s21, 4  ;;  %s4298_s22 = int_to_ptr.vmem [resolvable:$true] %s300_s22 }
  0x1c   : > { %s5061_s4 = sld [smem:[#allocation28_spill]] }
  0x1d   : > { %p4294_p11 = pnand %p3779_p9, %p5025_p1 }
  0x1f   : > { %s5060_s20 = scalar_select %p4294_p11, 1, 0 }
  0x20   : > { %p4308_p13 = pneg %p4294_p11 }
  0x22   : > { %s3889_s25 = scalar_lea.hbm %s5061_s4, 512 }
  0x23   : > { %p3890_p12 = scmp.ne.s32.totalorder %s5061_s4, %s3889_s25  ;;  %p3896_p5 = scmp.lt.u32.totalorder %s3889_s25, %s5061_s4 }
  0x24   : > { %s5062_s28 = scalar_select %p4308_p13, 1, 0 }
  0x25   : > { %p3892_p0 = pnand %p4308_p13, %p3890_p12 }
  0x27   : > { %p3893_p3 = pneg %p3892_p0 }
  0x29   : > { %p3898_p7 = pnand %p3896_p5, %p3893_p3 }
  0x2b   : > { %3901 = shalt.err (!%p3898_p7)
}
  0x2c   : > { %s3902_s18 = scalar_lea.vmem %s4287_s19, 512  ;;  %p3910_p2 = scmp.lt.s32.totalorder %s4287_s19, %s4287_s19 }
  0x2d   : > { %p3903_p9 = scmp.ne.s32.totalorder %s4287_s19, %s3902_s18  ;;  %p3911_p6 = scmp.lt.s32.totalorder %s3902_s18, %s3902_s18 }
  0x2f   : > { %p3905_p10 = pnand %p3903_p9, %p4308_p13  ;;  %p3912_p12 = por %p3911_p6, %p3910_p2 }
  0x31   : > { %p3906_p1 = pneg %p3905_p10 }
  0x33   : > { %p3913_p0 = pnand %p3912_p12, %p3906_p1 }
  0x35   : > { %3916 = shalt.err (!%p3913_p0)
}
  0x36   : > { %s5028_s21 = smov 128   ;;  %s5030_s23 = smov 8  }
  0x37   : > { %3782 = dma.hbm_to_vmem [thread:$0]  (!%p4294_p11), %s5061_s4, 512, %s4287_s19, [#allocation9], %s5028_s21, %s5028_s21, %s5030_s23  }
  0x38   : > { %s5063_s6 = sld [smem:[#allocation30_spill]] }
  0x3e   : > { %s3917_s29 = scalar_lea.hbm %s5063_s6, 512 }
  0x3f   : > { %p3918_p1 = scmp.ne.s32.totalorder %s5063_s6, %s3917_s29  ;;  %p3924_p10 = scmp.lt.u32.totalorder %s3917_s29, %s5063_s6 }
  0x41   : > { %p3920_p2 = pnand %p3918_p1, %p4308_p13 }
  0x43   : > { %p3921_p6 = pneg %p3920_p2 }
  0x45   : > { %p3926_p3 = pnand %p3924_p10, %p3921_p6 }
  0x47   : > { %3929 = shalt.err (!%p3926_p3)
}
  0x48   : > { %s3930_s19 = scalar_lea.vmem %s4298_s22, 512  ;;  %p3938_p12 = scmp.lt.s32.totalorder %s4298_s22, %s4298_s22 }
  0x49   : > { %p3931_p5 = scmp.ne.s32.totalorder %s4298_s22, %s3930_s19  ;;  %p3939_p0 = scmp.lt.s32.totalorder %s3930_s19, %s3930_s19 }
  0x4b   : > { %p3933_p7 = pnand %p3931_p5, %p4308_p13  ;;  %p3940_p1 = por %p3939_p0, %p3938_p12 }
  0x4d   : > { %p3934_p9 = pneg %p3933_p7 }
  0x4f   : > { %p3941_p2 = pnand %p3940_p1, %p3934_p9 }
  0x51   : > { %3944 = shalt.err (!%p3941_p2)
}
  0x52   : > { %3785 = dma.hbm_to_vmem [thread:$0]  (!%p4294_p11), %s5063_s6, 512, %s4298_s22, [#allocation12], %s5028_s21, %s5028_s21, %s5030_s23  }
  0x53   : > { %s4359_s24 = sadd.s32 1, %s4175_s12   ;;  %s39_s25 = sadd.s32 1, %s4171_s11 }
  0x54   : > { %5064 = sst [smem:[#allocation24_spill]] %s4359_s24  ;;  %s36_s26 = ssub.s32 %s4175_s12, %s4359_s24 }
  0x55   : > { %p46_p6 = scmp.ne.s32.totalorder %s4171_s11, %s4167_s10  ;;  %p37_p10 = scmp.eq.s32.totalorder %s36_s26, 0 }
  0x56   : > { %p47_p3 = scmp.eq.s32.totalorder %s4175_s12, 0  ;;  %p5065_p5 = scmp.eq.s32.totalorder %s4264_s13, 1 }
  0x57   : > { %p3809_p9 = scmp.lt.s32.totalorder %s4175_s12, 2  ;;  %s4378_s22 = sand.u32 1, %s4171_s11  }
  0x58   : > { %p4369_p7 = por %p5065_p5, %p46_p6  ;;  %p48_p12 = por %p47_p3, %p46_p6 }
  0x59   : > { %s4375_s29 = scalar_select %p37_p10, %s4171_s11, %s39_s25  }
  0x5a   : > { %s5066_s27 = scalar_select %p4369_p7, 1, 0 }
  0x5b   : > { %5068 = sst [smem:[#allocation26_spill]] %s4375_s29  ;;  %s5032_s14 = sshll.u32 %s4378_s22, 3 }
  0x5c   : > { %5067 = sst [smem:[#allocation25_spill]] %s5066_s27  ;;  %s5033_s18 = sshll.u32 %s4175_s12, 7 }
  0x5d   : > { %p4382_p0 = pnand %p3809_p9, %p48_p12  ;;  %s5036_s30 = sand.u32 1, %s4175_s12  }
  0x5e   : > { %s5070_s1 = sld [smem:[#allocation27_spill]]  ;;  %s352_s21 = scalar_lea.vmem [#allocation5], %s5032_s14 }
  0x5f   : > { %s5069_s19 = scalar_select %p4382_p0, 1, 0 }
  0x60   : > { %s359_s23 = sshll.u32 %s352_s21, 4  ;;  %s4401_s6 = scalar_lea.sflag [#allocation6], %s5036_s30  ;;  %s4397_s23 = int_to_ptr.vmem [resolvable:$true] %s359_s23 }
  0x61   : > { %p4407_p2 = pneg %p4382_p0 }
  0x64   : > { %s4392_s25 = scalar_lea.hbm %s5070_s1, %s5033_s18  ;;  %s3950_s21 = scalar_lea.hbm %s5070_s1, 256 }
  0x65   : > { %s3945_s29 = scalar_lea.hbm %s4392_s25, 128  ;;  %p3951_p3 = scmp.lt.u32.totalorder %s4392_s25, %s5070_s1 }
  0x66   : > { %p3946_p1 = scmp.ne.s32.totalorder %s4392_s25, %s3945_s29  ;;  %p3952_p5 = scmp.lt.u32.totalorder %s3950_s21, %s3945_s29 }
  0x67   : > { %p3954_p12 = scmp.lt.u32.totalorder %s3945_s29, %s4392_s25 }
  0x68   : > { %p3948_p6 = pnand %p4407_p2, %p3946_p1  ;;  %p3953_p9 = por %p3952_p5, %p3951_p3 }
  0x6a   : > { %p3949_p10 = pneg %p3948_p6  ;;  %p3955_p7 = por %p3954_p12, %p3953_p9 }
  0x6c   : > { %p3956_p4 = pnand %p3955_p7, %p3949_p10 }
  0x6e   : > { %3959 = shalt.err (!%p3956_p4)
}
  0x6f   : > { %s3960_s30 = scalar_lea.vmem %s4397_s23, 128  ;;  %s4181_s14 = smov [#allocation5]  }
  0x70   : > { %p3961_p1 = scmp.ne.s32.totalorder %s4397_s23, %s3960_s30  ;;  %s3965_s26 = sshll.u32 %s4181_s14, 4  ;;  %s3966_s26 = int_to_ptr.vmem [resolvable:$false] %s3965_s26 }
  0x71   : > { %s3967_s4 = scalar_lea.vmem %s3966_s26, 256  ;;  %p3968_p11 = scmp.lt.s32.totalorder %s4397_s23, %s3966_s26 }
  0x72   : > { %p3963_p6 = pnand %p3961_p1, %p4407_p2  ;;  %p3969_p13 = scmp.lt.s32.totalorder %s3967_s4, %s3960_s30 }
  0x74   : > { %p3964_p8 = pneg %p3963_p6  ;;  %p3970_p3 = por %p3969_p13, %p3968_p11 }
  0x76   : > { %p3971_p5 = pnand %p3970_p3, %p3964_p8 }
  0x78   : > { %3974 = shalt.err (!%p3971_p5)
}
  0x79   : > { %3795 = dma.hbm_to_vmem [thread:$0]  (!%p4382_p0), %s4392_s25, 128, %s4397_s23, %s4401_s6  }
  0x7a   : > { %s5072_s29 = sshll.u32 %s4378_s22, 8  ;;  %s4182_s4 = smov [#allocation13]  }
  0x7b   : > { %s370_s18 = scalar_lea.vmem [#allocation7], %s5072_s29  ;;  %s5073_s14 = smov %s5072_s29 }
  0x7c   : > { %s378_s21 = sshll.u32 %s370_s18, 4  ;;  %s392_s26 = scalar_lea.vmem [#allocation8], %s5073_s14  ;;  %s4433_s21 = int_to_ptr.vmem [resolvable:$true] %s378_s21 }
  0x7d   : > { %s400_s30 = sshll.u32 %s392_s26, 4  ;;  %s313_s1 = sshll.u32 %s4182_s4, 4  ;;  %s4437_s30 = int_to_ptr.vmem [resolvable:$true] %s400_s30  ;;  %s314_s1 = int_to_ptr.vmem [resolvable:$true] %s313_s1 }
  0x7e   : > { %s3975_s9 = scalar_lea.hbm %s5022_s7, 512  ;;  %p5074_p8 = scmp.ne.s32.totalorder %s5062_s28, 0 }
  0x7f   : > { %p3976_p4 = scmp.ne.s32.totalorder %s5022_s7, %s3975_s9  ;;  %p3982_p7 = scmp.lt.u32.totalorder %s3975_s9, %s5022_s7 }
  0x81   : > { %p3978_p11 = pnand %p3976_p4, %p5074_p8 }
  0x83   : > { %p3979_p13 = pneg %p3978_p11 }
  0x85   : > { %p3984_p10 = pnand %p3982_p7, %p3979_p13 }
  0x87   : > { %3987 = shalt.err (!%p3984_p10)
}
  0x88   : > { %s3988_s29 = scalar_lea.vmem %s314_s1, 512  ;;  %p3996_p6 = scmp.lt.s32.totalorder %s314_s1, %s314_s1 }
  0x89   : > { %p3989_p9 = scmp.ne.s32.totalorder %s314_s1, %s3988_s29  ;;  %p3997_p3 = scmp.lt.s32.totalorder %s3988_s29, %s3988_s29 }
  0x8b   : > { %p3991_p12 = pnand %p3989_p9, %p5074_p8  ;;  %p3998_p5 = por %p3997_p3, %p3996_p6 }
  0x8d   : > { %p3992_p1 = pneg %p3991_p12 }
  0x8f   : > { %p3999_p0 = pnand %p3998_p5, %p3992_p1 }
  0x91   : > { %4002 = shalt.err (!%p3999_p0)
}
  0x92   : > { %p5075_p4 = scmp.ne.s32.totalorder %s5060_s20, 0  ;;  %s5076_s5 = smov 8  }
  0x93   : > { %s5077_s11 = smov 128   ;;  %s5078_s28 = sshll.u32 %s4175_s12, 7 }
  0x94   : > { %3788 = dma.hbm_to_vmem [thread:$0]  (!%p5075_p4), %s5022_s7, 512, %s314_s1, [#allocation12], %s5077_s11, %s5077_s11, %s5076_s5  }
  0x95   : > { %s4465_s14 = scalar_lea.hbm %s5015_s0, %s5078_s28  ;;  %s5079_s20 = sshll.u32 %s4378_s22, 3 }
  0x96   : > { %s334_s26 = scalar_lea.vmem [#allocation2], %s5079_s20  ;;  %s3127_s23 = sshll.u32 %s4175_s12, 12 }
  0x97   : > { %s341_s4 = sshll.u32 %s334_s26, 4  ;;  %s4477_s1 = scalar_lea.hbm %s5017_s2, %s3127_s23  ;;  %s4470_s4 = int_to_ptr.vmem [resolvable:$true] %s341_s4 }
  0x98   : > { %s331_s24 = scalar_lea.sflag [#allocation3], %s4378_s22  ;;  %s4003_s9 = scalar_lea.hbm %s4465_s14, 128 }
  0x99   : > { %p4004_p0 = scmp.ne.s32.totalorder %s4465_s14, %s4003_s9  ;;  %s4008_s18 = scalar_lea.hbm %s5015_s0, 256 }
  0x9a   : > { %p4009_p13 = scmp.lt.u32.totalorder %s4465_s14, %s5015_s0  ;;  %p4010_p7 = scmp.lt.u32.totalorder %s4008_s18, %s4003_s9 }
  0x9b   : > { %p4006_p8 = pnand %p4004_p0, %p4407_p2  ;;  %p4012_p9 = scmp.lt.u32.totalorder %s4003_s9, %s4465_s14 }
  0x9c   : > { %p4011_p10 = por %p4010_p7, %p4009_p13 }
  0x9d   : > { %p4007_p11 = pneg %p4006_p8 }
  0x9e   : > { %p4013_p12 = por %p4012_p9, %p4011_p10 }
  0xa0   : > { %p4014_p1 = pnand %p4013_p12, %p4007_p11 }
  0xa2   : > { %4017 = shalt.err (!%p4014_p1)
}
  0xa3   : > { %s4018_s22 = scalar_lea.vmem %s4470_s4, 128  ;;  %s4183_s25 = smov [#allocation2]  }
  0xa4   : > { %p4019_p6 = scmp.ne.s32.totalorder %s4470_s4, %s4018_s22  ;;  %s4023_s29 = sshll.u32 %s4183_s25, 4  ;;  %s4024_s29 = int_to_ptr.vmem [resolvable:$false] %s4023_s29 }
  0xa5   : > { %s4025_s28 = scalar_lea.vmem %s4024_s29, 256  ;;  %p4026_p4 = scmp.lt.s32.totalorder %s4470_s4, %s4024_s29 }
  0xa6   : > { %p4021_p3 = pnand %p4019_p6, %p4407_p2  ;;  %p4027_p0 = scmp.lt.s32.totalorder %s4025_s28, %s4018_s22 }
  0xa8   : > { %p4022_p5 = pneg %p4021_p3  ;;  %p4028_p8 = por %p4027_p0, %p4026_p4 }
  0xaa   : > { %p4029_p13 = pnand %p4028_p8, %p4022_p5 }
  0xac   : > { %4032 = shalt.err (!%p4029_p13)
}
  0xad   : > { %p5080_p11 = scmp.ne.s32.totalorder %s5069_s19, 0  ;;  %s4033_s9 = scalar_lea.hbm %s4477_s1, 4096 }
  0xae   : > { %p4034_p7 = scmp.ne.s32.totalorder %s4477_s1, %s4033_s9  ;;  %s4038_s20 = scalar_lea.hbm %s5017_s2, 8192 }
  0xaf   : > { %3792 = dma.hbm_to_vmem [thread:$0]  (!%p5080_p11), %s4465_s14, 128, %s4470_s4, %s331_s24  }
  0xb0   : > { %p4036_p10 = pnand %p4034_p7, %p4407_p2  ;;  %p4039_p12 = scmp.lt.u32.totalorder %s4477_s1, %s5017_s2 }
  0xb1   : > { %p4040_p1 = scmp.lt.u32.totalorder %s4038_s20, %s4033_s9  ;;  %p4042_p3 = scmp.lt.u32.totalorder %s4033_s9, %s4477_s1 }
  0xb2   : > { %p4037_p9 = pneg %p4036_p10 }
  0xb3   : > { %p4041_p6 = por %p4040_p1, %p4039_p12 }
  0xb5   : > { %p4043_p5 = por %p4042_p3, %p4041_p6 }
  0xb7   : > { %p4044_p4 = pnand %p4043_p5, %p4037_p9 }
  0xb9   : > { %4047 = shalt.err (!%p4044_p4)
}
  0xba   : > { %s4048_s14 = scalar_lea.vmem %s4433_s21, 4096  ;;  %s4184_s4 = smov [#allocation7]  }
  0xbb   : > { %p4049_p0 = scmp.ne.s32.totalorder %s4433_s21, %s4048_s14  ;;  %s4053_s24 = sshll.u32 %s4184_s4, 4  ;;  %s4054_s24 = int_to_ptr.vmem [resolvable:$false] %s4053_s24 }
  0xbc   : > { %s4055_s25 = scalar_lea.vmem %s4054_s24, 8192  ;;  %p4056_p7 = scmp.lt.s32.totalorder %s4433_s21, %s4054_s24 }
  0xbd   : > { %p4051_p8 = pnand %p4049_p0, %p4407_p2  ;;  %p4057_p10 = scmp.lt.s32.totalorder %s4055_s25, %s4048_s14 }
  0xbf   : > { %p4052_p13 = pneg %p4051_p8  ;;  %p4058_p12 = por %p4057_p10, %p4056_p7 }
  0xc1   : > { %p4059_p1 = pnand %p4058_p12, %p4052_p13 }
  0xc3   : > { %4062 = shalt.err (!%p4059_p1)
}
  0xc4   : > { %3798 = dma.hbm_to_vmem [thread:$0]  (!%p5080_p11), %s4477_s1, 4096, %s4433_s21, %s4401_s6, %s5077_s11, %s5077_s11, %s5076_s5  }
  0xc5   : > { %s4531_s9 = scalar_lea.hbm %s5018_s3, %s3127_s23  ;;  %s5081_s27 = sand.u32 1, %s4175_s12  }
  0xc6   : > { %s4535_s18 = scalar_lea.sflag [#allocation9], %s5081_s27  ;;  %s4063_s20 = scalar_lea.hbm %s4531_s9, 4096 }
  0xc7   : > { %p4064_p9 = scmp.ne.s32.totalorder %s4531_s9, %s4063_s20  ;;  %s4068_s21 = scalar_lea.hbm %s5018_s3, 8192 }
  0xc8   : > { %p4069_p5 = scmp.lt.u32.totalorder %s4531_s9, %s5018_s3  ;;  %p4070_p4 = scmp.lt.u32.totalorder %s4068_s21, %s4063_s20 }
  0xc9   : > { %p4066_p6 = pnand %p4064_p9, %p4407_p2  ;;  %p4072_p8 = scmp.lt.u32.totalorder %s4063_s20, %s4531_s9 }
  0xca   : > { %p4071_p0 = por %p4070_p4, %p4069_p5 }
  0xcb   : > { %p4067_p3 = pneg %p4066_p6 }
  0xcc   : > { %p4073_p13 = por %p4072_p8, %p4071_p0 }
  0xce   : > { %p4074_p7 = pnand %p4073_p13, %p4067_p3 }
  0xd0   : > { %4077 = shalt.err (!%p4074_p7)
}
  0xd1   : > { %s4078_s23 = scalar_lea.vmem %s4437_s30, 4096  ;;  %s4185_s14 = smov [#allocation8]  }
  0xd2   : > { %p4079_p10 = scmp.ne.s32.totalorder %s4437_s30, %s4078_s23  ;;  %s4083_s4 = sshll.u32 %s4185_s14, 4  ;;  %s4084_s4 = int_to_ptr.vmem [resolvable:$false] %s4083_s4 }
  0xd3   : > { %s4085_s24 = scalar_lea.vmem %s4084_s4, 8192  ;;  %p4086_p9 = scmp.lt.s32.totalorder %s4437_s30, %s4084_s4 }
  0xd4   : > { %p4081_p12 = pnand %p4079_p10, %p4407_p2  ;;  %p4087_p6 = scmp.lt.s32.totalorder %s4085_s24, %s4078_s23 }
  0xd6   : > { %p4082_p1 = pneg %p4081_p12  ;;  %p4088_p5 = por %p4087_p6, %p4086_p9 }
  0xd8   : > { %p4089_p4 = pnand %p4088_p5, %p4082_p1 }
  0xda   : > { %4092 = shalt.err (!%p4089_p4)
}
  0xdb   : > { %3801 = dma.hbm_to_vmem [thread:$0]  (!%p5080_p11), %s4531_s9, 4096, %s4437_s30, %s4535_s18, %s5077_s11, %s5077_s11, %s5076_s5  }
  0xdc   : > { %p5082_p2 = scmp.ne.s32.totalorder %s5059_s17, 0 }
  0xdd   : > { %s4565_s16 = sand.u32 (!%p5082_p2), 1, %s4167_s10   ;;  %p5083_p3 = scmp.ne.s32.totalorder (!%p5082_p2), %s5056_s15, 0 }
  0xde   : > { %412 = sbr.rel (%p5082_p2) target bundleno = 1161 (0x489), region = 56  ;;  %s4568_s25 = sshll.u32 (!%p5082_p2), %s4565_s16, 3 }
  0xdf   : > { %s415_s19 = scalar_lea.sflag (!%p5082_p2), [#allocation3], %s4565_s16  ;;  %s418_s29 = scalar_lea.vmem (!%p5082_p2), [#allocation2], %s4568_s25 }
  0xe5   : > { %4138 = dma.done.wait (%p5083_p3), %s415_s19, 128  }
  0xe6   : > { %4140 = vsyncadd (%p5083_p3), %s415_s19, 4294967168  ;;  %s423_s17 = sand.u32 1, %s4264_s13   ;;  %s427_s5 = scalar_lea.vmem [#allocation5], %s4568_s25 }
  0xe7   : > { %s424_s30 = scalar_lea.sflag [#allocation6], %s423_s17 }
  0xe8   : > { %4142 = dma.done.wait (%p5083_p3), %s424_s30, 4224  }
  0xe9   : > { %4144 = vsyncadd (%p5083_p3), %s424_s30, 4294963072  ;;  %s3054_s11 = sshll.u32 %s4565_s16, 8  ;;  %s442_s9 = scalar_lea.sflag [#allocation9], %s423_s17 }
  0xea   : > { %s4583_s28 = scalar_lea.vmem [#allocation7], %s3054_s11  ;;  %s4585_s27 = scalar_lea.vmem [#allocation8], %s3054_s11 }
  0xeb   : > { %4146 = dma.done.wait (%p5083_p3), %s442_s9, 4096  }
  0xec   : > { %4148 = vsyncadd (%p5083_p3), %s442_s9, 4294963200  ;;  %p5084_p11 = scmp.eq.s32.totalorder %s4264_s13, 0 }
  0xee   : > { %4150 = dma.done.wait (%p5084_p11), [#allocation9], 512   ;;  %p5085_p0 = pmov %p5084_p11 }
  0xf0   : > { %4152 = vsyncadd (%p5085_p0), [#allocation9], 4294966784  ;;  %p5086_p8 = pmov %p5085_p0 }
  0xf1   : > { %p5087_p13 = pmov %p5085_p0 }
  0xf2   : > { %4154 = dma.done.wait (%p5086_p8), [#allocation12], 1024  }
  0xf3   : > { %4156 = vsyncadd (%p5087_p13), [#allocation12], 4294966272  ;;  %v4186_v0 = vmov 0.0|0.0   ;;  %vm4187_vm0 = vmmov 0   ;;  %v4188_v1 = vmov 0.0   ;;  %v575_v2 = vld [vmem:[#allocation10] sm:$0xff]  ;;  %v826_v40 = vlaneseq }
  0xf4   : > { %3563 = vmatprep.subr.bf16.mxu0 %v4186_v0  ;;  %3569 = vmatprep.subr.bf16.mxu1 %v4186_v0  ;;  %v576_v3 = vld [vmem:[#allocation10 + $0x8] sm:$0xff]  ;;  %v669_v4 = vld [vmem:[#allocation11] sm:$0xff]  ;;  %v577_v7 = vld [vmem:[#allocation10 + $0x10] sm:$0xff]  ;;  %vm586_vm1 = vcmask 261120   ;;  %s5088_s6 = sld [smem:[#allocation29_spill]]  ;;  %vm2146_vm2 = vcmask 523264  }
  0xf5   : > { %3274 = vmatprep.mubr.msk.f32.mxu0 %vm4187_vm0, %v4188_v1  ;;  %3285 = vmatprep.mubr.msk.f32.mxu1 %vm4187_vm0, %v4188_v1  ;;  %v3564_v5 = vpack.c.bf16 %v576_v3, %v575_v2  ;;  %v670_v6 = vld [vmem:[#allocation11 + $0x8] sm:$0xff]  ;;  %v578_v8 = vld [vmem:[#allocation10 + $0x18] sm:$0xff]  ;;  %v671_v10 = vld [vmem:[#allocation11 + $0x10] sm:$0xff]  ;;  %v4189_v38 = vmov 1966171168   ;;  %v827_v47 = vshrl.u32 %v826_v40, 7 }
  0xf6   : > { %v3570_v9 = vpack.c.bf16 %v670_v6, %v669_v4  ;;  %v672_v11 = vld [vmem:[#allocation11 + $0x18] sm:$0xff]  ;;  %v3567_v12 = vpack.c.bf16 %v578_v8, %v577_v7  ;;  %v747_v13 = vld [vmem:[#allocation13] sm:$0xff]  ;;  %v748_v15 = vld [vmem:[#allocation13 + $0x8] sm:$0xff]  ;;  %v824_v39 = vunpack.c.l.s4 %v4189_v38  ;;  %vm2073_vm4 = vcmask 516096   ;;  %s4946_s21 = scalar_lea.vmem [#allocation14], %s4568_s25  ;;  %s5091_s1 = sld [smem:[#allocation25_spill]] }
  0xf7   : > { %3565 = vmatpush3.bf16.msra.mxu0 %v3564_v5  ;;  %v3573_v14 = vpack.c.bf16 %v672_v11, %v671_v10  ;;  %v660_v16 = vld [vmem:[%s427_s5] sm:$0xff]  ;;  %v3062_v17 = vld [vmem:[%s5023_s8] ss:$0 sm:$0xff]  ;;  %v3576_v19 = vpack.c.bf16 %v748_v15, %v747_v13  ;;  %v511_v25 = vld [vmem:[%s4583_s28 + $0x8] sm:$0xff]  ;;  %vm2843_vm5 = vcmask 253952   ;;  %s3130_s22 = sshll.u32 %s4264_s13, 7 }
  0xf8   : > { %3566 = vmatprep.subr.bf16.mxu0 %v4186_v0  ;;  %3571 = vmatpush3.bf16.msra.mxu1 %v3570_v9  ;;  %v574_v18 = vld [vmem:[%s418_s29] sm:$0xff]  ;;  %v668_v20 = vmul.f32 %v3062_v17, %v660_v16  ;;  %v749_v21 = vld [vmem:[#allocation13 + $0x10] sm:$0xff]  ;;  %v750_v22 = vld [vmem:[#allocation13 + $0x18] sm:$0xff]  ;;  %v825_v46 = vunpack.c.0.s8 %v824_v39  ;;  %s2866_s23 = sshll.u32 %s4946_s21, 4  ;;  %s5092_s24 = sld [smem:[#allocation31_spill]]  ;;  %s4969_s23 = int_to_ptr.vmem [resolvable:$true] %s2866_s23 }
  0xf9   : > { %3572 = vmatprep.subr.bf16.mxu1 %v4186_v0  ;;  %v3579_v23 = vpack.c.bf16 %v750_v22, %v749_v21  ;;  %v510_v24 = vld [vmem:[%s4583_s28] sm:$0xff]  ;;  %v515_v28 = vld [vmem:[%s4583_s28 + $0x28] sm:$0xff]  ;;  %v512_v30 = vld [vmem:[%s4583_s28 + $0x10] sm:$0xff]  ;;  %s2853_s13 = scalar_lea.sflag [#allocation4], %s4565_s16  ;;  %s4093_s19 = scalar_lea.vmem %s4969_s23, 128 }
  0xfa   : > { %v4629_v26 = vpack.c.bf16 %v511_v25, %v510_v24  ;;  %v514_v27 = vld [vmem:[%s4583_s28 + $0x20] sm:$0xff]  ;;  %v513_v31 = vld [vmem:[%s4583_s28 + $0x18] sm:$0xff]  ;;  %v516_v33 = vld [vmem:[%s4583_s28 + $0x30] sm:$0xff]  ;;  %v4656_v48 = vsub.s32 %v825_v46, %v827_v47  ;;  %p4094_p7 = scmp.ne.s32.totalorder %s4969_s23, %s4093_s19  ;;  %s4190_s29 = smov [#allocation14]  }
  0xfb   : > { %3568 = vmatpush3.bf16.msra.mxu0 %v3567_v12  ;;  %v4634_v29 = vpack.c.bf16 %v515_v28, %v514_v27  ;;  %v4640_v32 = vpack.c.bf16 %v513_v31, %v512_v30  ;;  %v517_v34 = vld [vmem:[%s4583_s28 + $0x38] sm:$0xff]  ;;  %v3060_v36 = vld [vmem:[%s5088_s6] ss:$0 sm:$0xff]  ;;  %v519_v51 = vld [vmem:[%s4583_s28 + $0x48] sm:$0xff]  ;;  %s4097_s17 = sshll.u32 %s4190_s29, 4  ;;  %s4098_s17 = int_to_ptr.vmem [resolvable:$false] %s4097_s17 }
  0xfc   : > { %3574 = vmatpush3.bf16.msra.mxu1 %v3573_v14  ;;  %3575 = vmatprep.subr.bf16.mxu0 %v4186_v0  ;;  %v4646_v35 = vpack.c.bf16 %v517_v34, %v516_v33  ;;  %v518_v50 = vld [vmem:[%s4583_s28 + $0x40] sm:$0xff]  ;;  %v523_v55 = vld [vmem:[%s4583_s28 + $0x68] sm:$0xff]  ;;  %v520_v59 = vld [vmem:[%s4583_s28 + $0x50] sm:$0xff]  ;;  %p5093_p10 = scmp.ne.s32.totalorder %s5091_s1, 0  ;;  %s4099_s30 = scalar_lea.vmem %s4098_s17, 256 }
  0xfd   : > { %3581 = vmatprep.subr.bf16.mxu1 %v4186_v0  ;;  %v522_v54 = vld [vmem:[%s4583_s28 + $0x60] sm:$0xff]  ;;  %v4663_v56 = vpack.c.bf16 %v519_v51, %v518_v50  ;;  %v521_v60 = vld [vmem:[%s4583_s28 + $0x58] sm:$0xff]  ;;  %v524_v63 = vld [vmem:[%s4583_s28 + $0x70] sm:$0xff]  ;;  %p4100_p9 = scmp.lt.s32.totalorder %s4969_s23, %s4098_s17  ;;  %p4101_p6 = scmp.lt.s32.totalorder %s4099_s30, %s4093_s19 }
  0xfe   : > { %3275 = vmatmul.mubr.msk.f32.vlgmr.msra.gmra.mrb[0].mxu0 %vm586_vm1, %v574_v18  ;;  %v4668_v61 = vpack.c.bf16 %v523_v55, %v522_v54  ;;  %v525_v2 = vld [vmem:[%s4583_s28 + $0x78] sm:$0xff]  ;;  %v4675_v3 = vpack.c.bf16 %v521_v60, %v520_v59  ;;  %v526_v4 = vld [vmem:[%s4583_s28 + $0x80] sm:$0xff]  ;;  %v527_v5 = vld [vmem:[%s4583_s28 + $0x88] sm:$0xff]  ;;  %s4967_s25 = scalar_lea.hbm %s5092_s24, %s3130_s22  ;;  %p4095_p12 = pnand %p4094_p7, %p5093_p10 }
  0xff   : > { %3577 = vmatpush3.bf16.msra.mxu0 %v3576_v19  ;;  %3286 = vmatmul.mubr.msk.f32.vlgmr.msra.gmra.mrb[0].mxu1 %vm586_vm1, %v668_v20  ;;  %v4684_v6 = vpack.c.bf16 %v525_v2, %v524_v63  ;;  %v530_v8 = vld [vmem:[%s4583_s28 + $0xa0] sm:$0xff]  ;;  %v531_v9 = vld [vmem:[%s4583_s28 + $0xa8] sm:$0xff]  ;;  %v4692_v10 = vpack.c.bf16 %v527_v5, %v526_v4  ;;  %v528_v12 = vld [vmem:[%s4583_s28 + $0x90] sm:$0xff]  ;;  %p4102_p5 = por %p4101_p6, %p4100_p9 }
 0x100   : > { %3578 = vmatprep.subr.bf16.mxu0 %v4186_v0  ;;  %3296 = vmatprep.mubr.msk.f32.mxu0 %vm4187_vm0, %v4188_v1  ;;  %v529_v13 = vld [vmem:[%s4583_s28 + $0x98] sm:$0xff]  ;;  %v4698_v14 = vpack.c.bf16 %v531_v9, %v530_v8  ;;  %v532_v17 = vld [vmem:[%s4583_s28 + $0xb0] sm:$0xff]  ;;  %v535_v21 = vld [vmem:[%s4583_s28 + $0xc8] sm:$0xff]  ;;  %p4096_p1 = pneg %p4095_p12 }
 0x101   : > { %3307 = vmatprep.mubr.msk.f32.mxu1 %vm4187_vm0, %v4188_v1  ;;  %3583 = vmatpush3.bf16.msra.mxu1 %v4629_v26  ;;  %v533_v18 = vld [vmem:[%s4583_s28 + $0xb8] sm:$0xff]  ;;  %v4706_v19 = vpack.c.bf16 %v529_v13, %v528_v12  ;;  %v538_v24 = vld [vmem:[%s4583_s28 + $0xe0] sm:$0xff]  ;;  %v539_v25 = vld [vmem:[%s4583_s28 + $0xe8] sm:$0xff] }
 0x102   : > { %3584 = vmatprep.subr.bf16.mxu1 %v4186_v0  ;;  %v4715_v22 = vpack.c.bf16 %v533_v18, %v532_v17  ;;  %v536_v30 = vld [vmem:[%s4583_s28 + $0xd0] sm:$0xff]  ;;  %v537_v31 = vld [vmem:[%s4583_s28 + $0xd8] sm:$0xff]  ;;  %v4730_v33 = vpack.c.bf16 %v539_v25, %v538_v24  ;;  %v542_v39 = vld [vmem:[%s4585_s27] sm:$0xff]  ;;  %p4103_p4 = pnand %p4102_p5, %p4096_p1 }
 0x103   : > { %3580 = vmatpush3.bf16.msra.mxu0 %v3579_v23  ;;  %v4738_v38 = vpack.c.bf16 %v537_v31, %v536_v30  ;;  %v543_v40 = vld [vmem:[%s4585_s27 + $0x8] sm:$0xff]  ;;  %v544_v47 = vld [vmem:[%s4585_s27 + $0x10] sm:$0xff]  ;;  %v549_v54 = vld [vmem:[%s4585_s27 + $0x38] sm:$0xff] }
 0x104   : > { %3587 = vmatprep.subr.bf16.mxu0 %v4186_v0  ;;  %v555_v63 = vld [vmem:[%s4585_s27 + $0x68] sm:$0xff]  ;;  %v552_v5 = vld [vmem:[%s4585_s27 + $0x50] sm:$0xff]  ;;  %v557_v12 = vld [vmem:[%s4585_s27 + $0x78] sm:$0xff] }
 0x105   : > { %3586 = vmatpush3.bf16.msra.mxu1 %v4640_v32  ;;  %v560_v25 = vld [vmem:[%s4585_s27 + $0x90] sm:$0xff]  ;;  %vm4843_vm3 = vmpackc.low %vm2146_vm2, %vm2146_vm2 }
 0x106   : > { %3297 = vmatmul.mubr.msk.f32.vlgmr.msra.gmra.mrb[2].mxu0 %vm586_vm1, %v668_v20  ;;  %3593 = vmatprep.subr.bf16.mxu1 %v4186_v0  ;;  %v534_v20 = vld [vmem:[%s4583_s28 + $0xc0] sm:$0xff] }
 0x107   : > { %3318 = vmatprep.mubr.msk.f32.mxu0 %vm4187_vm0, %v4188_v1  ;;  %3589 = vmatpush3.bf16.msra.mxu0 %v4634_v29  ;;  %v4723_v27 = vpack.c.bf16 %v535_v21, %v534_v20  ;;  %v562_v20 = vld [vmem:[%s4585_s27 + $0xa0] sm:$0xff]  ;;  %v563_v21 = vld [vmem:[%s4585_s27 + $0xa8] sm:$0xff] }
 0x108   : > { %3590 = vmatprep.subr.bf16.mxu0 %v4186_v0  ;;  %v3660_v30 = vpack.c.bf16 %v563_v21, %v562_v20 }
 0x10b   : > { %3592 = vmatpush3.bf16.msra.mxu0 %v4646_v35 }
 0x10c   : > { %3599 = vmatprep.subr.bf16.mxu0 %v4186_v0 }
 0x1d1   : > { %v656_v37 = vpop.f32.mrb[0].mxu0 }
 0x1d2   : > { %v657_v41 = vadd.f32 %v3060_v36, %v656_v37  ;;  %v3276_v42 = vpop.f32.mrb[1].mxu0  ;;  %v742_v43 = vpop.f32.mrb[0].mxu1  ;;  %v540_v36 = vld [vmem:[%s4583_s28 + $0xf0] sm:$0xff]  ;;  %v541_v37 = vld [vmem:[%s4583_s28 + $0xf8] sm:$0xff] }
 0x1d3   : > { %v3287_v44 = vpop.f32.mrb[1].mxu1  ;;  %v546_v42 = vld [vmem:[%s4585_s27 + $0x20] sm:$0xff] }
 0x1d4   : > { %v4654_v45 = vmul.f32 %v742_v43, %v657_v41  ;;  %v4747_v41 = vpack.c.bf16 %v541_v37, %v540_v36  ;;  %v547_v43 = vld [vmem:[%s4585_s27 + $0x28] sm:$0xff]  ;;  %v3630_v44 = vpack.c.bf16 %v543_v40, %v542_v39  ;;  %v565_v36 = vld [vmem:[%s4585_s27 + $0xb8] sm:$0xff]  ;;  %v566_v39 = vld [vmem:[%s4585_s27 + $0xc0] sm:$0xff] }
 0x1d5   : > { %v3636_v50 = vpack.c.bf16 %v547_v43, %v546_v42  ;;  %v567_v40 = vld [vmem:[%s4585_s27 + $0xc8] sm:$0xff] }
 0x1d6   : > { %v829_v51 = vrot.slane %v4654_v45, %v4656_v48  ;;  %v822_v18 = vcombine.high %v4654_v45, %v4654_v45 }
 0x1d8   : > { %v837_v60 = vcombine.high %v829_v51, %v829_v51  ;;  %v845_v4 = vrot.slane %v829_v51, %v4656_v48  ;;  %v836_v31 = vrot.slane %v822_v18, %v4656_v48  ;;  %v569_v51 = vld [vmem:[%s4585_s27 + $0xd8] sm:$0xff] }
 0x1d9   : > { %v817_v49 = vpop.f32.mrb[2].mxu0 }
 0x1da   : > { %v3298_v52 = vpop.f32.mrb[3].mxu0  ;;  %v879_v53 = vrot.slane %v817_v49, %v4656_v48  ;;  %v872_v7 = vcombine.high %v817_v49, %v817_v49  ;;  %v545_v49 = vld [vmem:[%s4585_s27 + $0x18] sm:$0xff]  ;;  %v859_v9 = vrot.slane %v837_v60, %v4656_v48  ;;  %v867_v24 = vcombine.high %v845_v4, %v845_v4 }
 0x1db   : > { %v3633_v55 = vpack.c.bf16 %v545_v49, %v544_v47  ;;  %v838_v43 = vcombine.high %v836_v31, %v836_v31  ;;  %v3666_v47 = vpack.c.bf16 %v567_v40, %v566_v39  ;;  %v852_v49 = vrot.slane %v836_v31, %v4656_v48 }
 0x1dc   : > { %v887_v57 = vcombine.high %v879_v53, %v879_v53  ;;  %v895_v58 = vrot.slane %v879_v53, %v4656_v48  ;;  %v886_v15 = vrot.slane %v872_v7, %v4656_v48  ;;  %v548_v53 = vld [vmem:[%s4585_s27 + $0x30] sm:$0xff]  ;;  %v553_v7 = vld [vmem:[%s4585_s27 + $0x58] sm:$0xff]  ;;  %v869_v45 = vcombine.high %v859_v9, %v859_v9 }
 0x1dd   : > { %v3639_v59 = vpack.c.bf16 %v549_v54, %v548_v53  ;;  %v3645_v13 = vpack.c.bf16 %v553_v7, %v552_v5  ;;  %v866_v53 = vrot.slane %v838_v43, %v4656_v48  ;;  %v572_v54 = vld [vmem:[%s4585_s27 + $0xf0] sm:$0xff] }
 0x1de   : > { %v909_v62 = vrot.slane %v887_v57, %v4656_v48  ;;  %3308 = vmatmul.mubr.msk.f32.vlgmr.msra.gmra.mrb[2].mxu1 %vm586_vm1, %v895_v58  ;;  %v917_v11 = vcombine.high %v895_v58, %v895_v58  ;;  %v888_v23 = vcombine.high %v886_v15, %v886_v15  ;;  %v902_v28 = vrot.slane %v886_v15, %v4656_v48  ;;  %v550_v57 = vld [vmem:[%s4585_s27 + $0x40] sm:$0xff]  ;;  %v551_v58 = vld [vmem:[%s4585_s27 + $0x48] sm:$0xff] }
 0x1df   : > { %3595 = vmatpush3.bf16.msra.mxu1 %v4663_v56  ;;  %3329 = vmatprep.mubr.msk.f32.mxu1 %vm4187_vm0, %v4188_v1  ;;  %v3642_v2 = vpack.c.bf16 %v551_v58, %v550_v57  ;;  %v558_v15 = vld [vmem:[%s4585_s27 + $0x80] sm:$0xff] }
 0x1e0   : > { %3319 = vmatmul.mubr.msk.f32.vlgmr.msra.gmra.mrb[4].mxu0 %vm586_vm1, %v909_v62  ;;  %3596 = vmatprep.subr.bf16.mxu1 %v4186_v0  ;;  %v919_v16 = vcombine.high %v909_v62, %v909_v62  ;;  %v916_v34 = vrot.slane %v888_v23, %v4656_v48  ;;  %v918_v46 = vcombine.high %v902_v28, %v902_v28  ;;  %v554_v62 = vld [vmem:[%s4585_s27 + $0x60] sm:$0xff] }
 0x1e1   : > { %3601 = vmatpush3.bf16.msra.mxu0 %v4668_v61  ;;  %3340 = vmatprep.mubr.msk.f32.mxu0 %vm4187_vm0, %v4188_v1  ;;  %v3648_v8 = vpack.c.bf16 %v555_v63, %v554_v62  ;;  %v868_v48 = vcombine.high %v852_v49, %v852_v49 }
 0x1e2   : > { %3602 = vmatprep.subr.bf16.mxu0 %v4186_v0  ;;  %v920_v52 = vcombine.high %v916_v34, %v916_v34 }
 0x1e3   : > { %3598 = vmatpush3.bf16.msra.mxu1 %v4675_v3 }
 0x1e4   : > { %3605 = vmatprep.subr.bf16.mxu1 %v4186_v0 }
 0x1e5   : > { %3604 = vmatpush3.bf16.msra.mxu0 %v4684_v6 }
 0x1e6   : > { %3330 = vmatmul.mubr.msk.f32.vlgmr.msra.gmra.mrb[4].mxu1 %vm586_vm1, %v917_v11  ;;  %3611 = vmatprep.subr.bf16.mxu0 %v4186_v0  ;;  %v556_v11 = vld [vmem:[%s4585_s27 + $0x70] sm:$0xff] }
 0x1e7   : > { %3607 = vmatpush3.bf16.msra.mxu1 %v4692_v10  ;;  %3351 = vmatprep.mubr.msk.f32.mxu1 %vm4187_vm0, %v4188_v1  ;;  %v3651_v17 = vpack.c.bf16 %v557_v12, %v556_v11 }
 0x1e8   : > { %3341 = vmatmul.mubr.msk.f32.vlgmr.msra.gmra.mrb[6].mxu0 %vm586_vm1, %v919_v16  ;;  %3608 = vmatprep.subr.bf16.mxu1 %v4186_v0  ;;  %v559_v16 = vld [vmem:[%s4585_s27 + $0x88] sm:$0xff] }
 0x1e9   : > { %3613 = vmatpush3.bf16.msra.mxu0 %v4698_v14  ;;  %3362 = vmatprep.mubr.msk.f32.mxu0 %vm4187_vm0, %v4188_v1  ;;  %v3654_v23 = vpack.c.bf16 %v559_v16, %v558_v15 }
 0x1ea   : > { %3614 = vmatprep.subr.bf16.mxu0 %v4186_v0 }
 0x1eb   : > { %3610 = vmatpush3.bf16.msra.mxu1 %v4706_v19 }
 0x1ec   : > { %3617 = vmatprep.subr.bf16.mxu1 %v4186_v0 }
 0x1ed   : > { %3616 = vmatpush3.bf16.msra.mxu0 %v4715_v22 }
 0x1ee   : > { %3352 = vmatmul.mubr.msk.f32.vlgmr.msra.gmra.mrb[6].mxu1 %vm586_vm1, %v902_v28  ;;  %3623 = vmatprep.subr.bf16.mxu0 %v4186_v0  ;;  %v561_v28 = vld [vmem:[%s4585_s27 + $0x98] sm:$0xff] }
 0x1ef   : > { %3619 = vmatpush3.bf16.msra.mxu1 %v4723_v27  ;;  %3373 = vmatprep.mubr.msk.f32.mxu1 %vm4187_vm0, %v4188_v1  ;;  %v3657_v37 = vpack.c.bf16 %v561_v28, %v560_v25 }
 0x1f0   : > { %3363 = vmatmul.mubr.msk.f32.vlgmr.msra.gmra.mrb[8].mxu0 %vm586_vm1, %v916_v34  ;;  %3620 = vmatprep.subr.bf16.mxu1 %v4186_v0  ;;  %v564_v34 = vld [vmem:[%s4585_s27 + $0xb0] sm:$0xff] }
 0x1f1   : > { %3625 = vmatpush3.bf16.msra.mxu0 %v4730_v33  ;;  %3384 = vmatprep.mubr.msk.f32.mxu0 %vm4187_vm0, %v4188_v1  ;;  %v3663_v42 = vpack.c.bf16 %v565_v36, %v564_v34 }
 0x1f2   : > { %3626 = vmatprep.subr.bf16.mxu0 %v4186_v0 }
 0x1f3   : > { %3622 = vmatpush3.bf16.msra.mxu1 %v4738_v38 }
 0x1f4   : > { %3629 = vmatprep.subr.bf16.mxu1 %v4186_v0 }
 0x1f5   : > { %3628 = vmatpush3.bf16.msra.mxu0 %v4747_v41 }
 0x1f6   : > { %3374 = vmatmul.mubr.msk.f32.vlgmr.msra.gmra.mrb[8].mxu1 %vm586_vm1, %v918_v46  ;;  %3635 = vmatprep.subr.bf16.mxu0 %v4186_v0  ;;  %v571_v46 = vld [vmem:[%s4585_s27 + $0xe8] sm:$0xff] }
 0x1f7   : > { %3631 = vmatpush3.bf16.msra.mxu1 %v3630_v44  ;;  %3395 = vmatprep.mubr.msk.f32.mxu1 %vm4187_vm0, %v4188_v1  ;;  %v570_v44 = vld [vmem:[%s4585_s27 + $0xe0] sm:$0xff] }
 0x1f8   : > { %3385 = vmatmul.mubr.msk.f32.vlgmr.msra.gmra.mrb[10].mxu0 %vm586_vm1, %v920_v52  ;;  %3632 = vmatprep.subr.bf16.mxu1 %v4186_v0  ;;  %v3672_v52 = vpack.c.bf16 %v571_v46, %v570_v44 }
 0x1f9   : > { %3637 = vmatpush3.bf16.msra.mxu0 %v3636_v50  ;;  %3406 = vmatprep.mubr.msk.f32.mxu0 %vm4187_vm0, %v4188_v1  ;;  %v568_v50 = vld [vmem:[%s4585_s27 + $0xd0] sm:$0xff] }
 0x1fa   : > { %3638 = vmatprep.subr.bf16.mxu0 %v4186_v0  ;;  %v3669_v57 = vpack.c.bf16 %v569_v51, %v568_v50 }
 0x1fb   : > { %3634 = vmatpush3.bf16.msra.mxu1 %v3633_v55  ;;  %v573_v55 = vld [vmem:[%s4585_s27 + $0xf8] sm:$0xff] }
 0x1fc   : > { %3641 = vmatprep.subr.bf16.mxu1 %v4186_v0  ;;  %v3675_v58 = vpack.c.bf16 %v573_v55, %v572_v54 }
 0x1fd   : > { %3640 = vmatpush3.bf16.msra.mxu0 %v3639_v59  ;;  %v870_v59 = vcombine.high %v866_v53, %v866_v53 }
 0x1fe   : > { %3396 = vmatmul.mubr.msk.f32.vlgmr.msra.gmra.mrb[2].mxu1 %vm586_vm1, %v845_v4  ;;  %3647 = vmatprep.subr.bf16.mxu0 %v4186_v0 }
 0x1ff   : > { %3643 = vmatpush3.bf16.msra.mxu1 %v3642_v2  ;;  %3417 = vmatprep.mubr.msk.f32.mxu1 %vm4187_vm0, %v4188_v1 }
 0x200   : > { %3407 = vmatmul.mubr.msk.f32.vlgmr.msra.gmra.mrb[4].mxu0 %vm586_vm1, %v859_v9  ;;  %3644 = vmatprep.subr.bf16.mxu1 %v4186_v0 }
 0x201   : > { %3649 = vmatpush3.bf16.msra.mxu0 %v3648_v8  ;;  %3428 = vmatprep.mubr.msk.f32.mxu0 %vm4187_vm0, %v4188_v1 }
 0x202   : > { %3650 = vmatprep.subr.bf16.mxu0 %v4186_v0 }
 0x203   : > { %3646 = vmatpush3.bf16.msra.mxu1 %v3645_v13 }
 0x204   : > { %3653 = vmatprep.subr.bf16.mxu1 %v4186_v0 }
 0x205   : > { %3652 = vmatpush3.bf16.msra.mxu0 %v3651_v17 }
 0x206   : > { %3418 = vmatmul.mubr.msk.f32.vlgmr.msra.gmra.mrb[4].mxu1 %vm586_vm1, %v867_v24  ;;  %3659 = vmatprep.subr.bf16.mxu0 %v4186_v0 }
 0x207   : > { %3655 = vmatpush3.bf16.msra.mxu1 %v3654_v23  ;;  %3439 = vmatprep.mubr.msk.f32.mxu1 %vm4187_vm0, %v4188_v1 }
 0x208   : > { %3429 = vmatmul.mubr.msk.f32.vlgmr.msra.gmra.mrb[6].mxu0 %vm586_vm1, %v869_v45  ;;  %3656 = vmatprep.subr.bf16.mxu1 %v4186_v0 }
 0x209   : > { %3661 = vmatpush3.bf16.msra.mxu0 %v3660_v30  ;;  %3450 = vmatprep.mubr.msk.f32.mxu0 %vm4187_vm0, %v4188_v1 }
 0x20a   : > { %3662 = vmatprep.subr.bf16.mxu0 %v4186_v0 }
 0x20b   : > { %3658 = vmatpush3.bf16.msra.mxu1 %v3657_v37 }
 0x20c   : > { %3665 = vmatprep.subr.bf16.mxu1 %v4186_v0 }
 0x20d   : > { %3664 = vmatpush3.bf16.msra.mxu0 %v3663_v42 }
 0x20e   : > { %3440 = vmatmul.mubr.msk.f32.vlgmr.msra.gmra.mrb[6].mxu1 %vm586_vm1, %v852_v49  ;;  %3671 = vmatprep.subr.bf16.mxu0 %v4186_v0 }
 0x20f   : > { %3667 = vmatpush3.bf16.msra.mxu1 %v3666_v47  ;;  %3461 = vmatprep.mubr.msk.f32.mxu1 %vm4187_vm0, %v4188_v1 }
 0x210   : > { %3451 = vmatmul.mubr.msk.f32.vlgmr.msra.gmra.mrb[8].mxu0 %vm586_vm1, %v866_v53  ;;  %3668 = vmatprep.subr.bf16.mxu1 %v4186_v0 }
 0x211   : > { %3673 = vmatpush3.bf16.msra.mxu0 %v3672_v52  ;;  %3472 = vmatprep.mubr.msk.f32.mxu0 %vm4187_vm0, %v4188_v1 }
 0x212   : > { %3674 = vmatprep.subr.bf16.mxu0 %v4186_v0 }
 0x213   : > { %3670 = vmatpush3.bf16.msra.mxu1 %v3669_v57 }
 0x214   : > { %3677 = vmatprep.subr.bf16.mxu1 %v4186_v0 }
 0x215   : > { %3676 = vmatpush3.bf16.msra.mxu0 %v3675_v58 }
 0x216   : > { %3462 = vmatmul.mubr.msk.f32.vlgmr.msra.gmra.mrb[8].mxu1 %vm586_vm1, %v868_v48  ;;  %3685 = vmatprep.subr.bf16.mxu0 %v4186_v0 }
 0x217   : > { %3483 = vmatprep.mubr.msk.f32.mxu1 %vm4187_vm0, %v4188_v1 }
 0x218   : > { %3473 = vmatmul.mubr.msk.f32.vlgmr.msra.gmra.mrb[10].mxu0 %vm586_vm1, %v870_v59 }
 0x219   : > { %3494 = vmatprep.mubr.msk.f32.mxu0 %vm4187_vm0, %v4188_v1 }
 0x21c   : > { %3680 = vmatpush3.bf16.xpose.msk.msra.mxu1 %vm4843_vm3, %v4629_v26 }
 0x21d   : > { %3681 = vmatprep.subr.bf16.mxu1 %v4186_v0 }
 0x21e   : > { %3688 = vmatpush3.bf16.xpose.msk.msra.mxu0 %vm4843_vm3, %v4634_v29 }
 0x21f   : > { %3689 = vmatprep.subr.bf16.mxu0 %v4186_v0 }
 0x224   : > { %3684 = vmatpush3.bf16.xpose.msk.msra.mxu1 %vm4843_vm3, %v4640_v32 }
 0x225   : > { %3693 = vmatprep.subr.bf16.mxu1 %v4186_v0 }
 0x226   : > { %3692 = vmatpush3.bf16.xpose.msk.msra.mxu0 %vm4843_vm3, %v4646_v35 }
 0x227   : > { %3701 = vmatprep.subr.bf16.mxu0 %v4186_v0 }
 0x2d1   : > { %v1565_v26 = vpop.f32.mrb[2].mxu1 }
 0x2d2   : > { %v3397_v62 = vpop.f32.mrb[3].mxu1  ;;  %v2074_v29 = vsel %vm2073_vm4, %v1565_v26, -inf }
 0x2d3   : > { %v1637_v63 = vpop.f32.mrb[4].mxu0  ;;  %2075 = vmax.xlane.f32.xlu0 %v2074_v29 }
 0x2d4   : > { %v3408_v2 = vpop.f32.mrb[5].mxu0  ;;  %v2077_v4 = vsel %vm2073_vm4, %v1637_v63, -inf }
 0x2d7   : > { %2078 = vmax.xlane.f32.xlu0 %v2077_v4 }
 0x2d9   : > { %v1709_v32 = vpop.f32.mrb[4].mxu1 }
 0x2da   : > { %v3419_v5 = vpop.f32.mrb[5].mxu1  ;;  %v2080_v7 = vsel %vm2073_vm4, %v1709_v32, -inf }
 0x2db   : > { %v1781_v35 = vpop.f32.mrb[6].mxu0  ;;  %2081 = vmax.xlane.f32.xlu1 %v2080_v7 }
 0x2dc   : > { %v3430_v8 = vpop.f32.mrb[7].mxu0  ;;  %v2083_v9 = vsel %vm2073_vm4, %v1781_v35, -inf }
 0x2df   : > { %2084 = vmax.xlane.f32.xlu1 %v2083_v9 }
 0x2e1   : > { %v1853_v11 = vpop.f32.mrb[6].mxu1 }
 0x2e2   : > { %v3441_v12 = vpop.f32.mrb[7].mxu1  ;;  %v2086_v13 = vsel %vm2073_vm4, %v1853_v11, -inf }
 0x2e3   : > { %v1925_v15 = vpop.f32.mrb[8].mxu0  ;;  %2087 = vmax.xlane.f32.xlu0 %v2086_v13 }
 0x2e4   : > { %v3452_v16 = vpop.f32.mrb[9].mxu0  ;;  %v2089_v17 = vsel %vm2073_vm4, %v1925_v15, -inf }
 0x2e5   : > { %2090 = vmax.xlane.f32.xlu1 %v2089_v17 }
 0x2e9   : > { %v1997_v18 = vpop.f32.mrb[8].mxu1 }
 0x2ea   : > { %v3463_v20 = vpop.f32.mrb[9].mxu1  ;;  %v2092_v21 = vsel %vm2073_vm4, %v1997_v18, -inf }
 0x2eb   : > { %v2069_v23 = vpop.f32.mrb[10].mxu0  ;;  %2093 = vmax.xlane.f32.xlu0 %v2092_v21 }
 0x2ec   : > { %v3474_v24 = vpop.f32.mrb[11].mxu0  ;;  %v2095_v25 = vsel %vm2073_vm4, %v2069_v23, -inf }
 0x2ed   : > { %2096 = vmax.xlane.f32.xlu1 %v2095_v25 }
 0x360   : > { %v2076_v28 = vpop.xlane.xlu0 %2075 }
 0x361   : > { %v2098_v30 = vsub.f32 %v1565_v26, %v2076_v28 }
 0x363   : > { %v2106_v31 = vmul.f32 1.442695, %v2098_v30 }
 0x364   : > { %v2079_v45 = vpop.xlane.xlu0 %2078 }
 0x365   : > { %3857 = vpow2.f32 %v2106_v31  ;;  %v2099_v34 = vsub.f32 %v1637_v63, %v2079_v45 }
 0x367   : > { %v2108_v36 = vmul.f32 1.442695, %v2099_v34 }
 0x368   : > { %v2082_v37 = vpop.xlane.xlu1 %2081 }
 0x369   : > { %3859 = vpow2.f32 %v2108_v36  ;;  %v2100_v39 = vsub.f32 %v1709_v32, %v2082_v37 }
 0x36b   : > { %v2110_v40 = vmul.f32 1.442695, %v2100_v39 }
 0x36c   : > { %v2085_v42 = vpop.xlane.xlu1 %2084 }
 0x36d   : > { %3861 = vpow2.f32 %v2110_v40  ;;  %v2101_v43 = vsub.f32 %v1781_v35, %v2085_v42 }
 0x36f   : > { %v3858_v44 = vpop.eup %3857  ;;  %v2112_v46 = vmul.f32 1.442695, %v2101_v43 }
 0x370   : > { %3484 = vmatmul.mubr.msk.f32.vlgmr.msra.gmra.mrb[10].mxu1 %vm2146_vm2, %v3858_v44  ;;  %v2088_v47 = vpop.xlane.xlu0 %2087  ;;  %v2122_v49 = vsel %vm2073_vm4, %v3858_v44, 0.0 }
 0x371   : > { %3863 = vpow2.f32 %v2112_v46  ;;  %3696 = vmatpush3.bf16.xpose.msk.msra.mxu1 %vm4843_vm3, %v4663_v56  ;;  %v2102_v50 = vsub.f32 %v1853_v11, %v2088_v47  ;;  %2123 = vadd.xlane.f32.xlu0 %v2122_v49 }
 0x372   : > { %v2091_v51 = vpop.xlane.xlu1 %2090  ;;  %3697 = vmatprep.subr.bf16.mxu1 %v4186_v0  ;;  %3505 = vmatprep.mubr.msk.f32.mxu1 %vm4187_vm0, %v4188_v1 }
 0x373   : > { %v3860_v52 = vpop.eup %3859  ;;  %v2114_v53 = vmul.f32 1.442695, %v2102_v50  ;;  %v2103_v54 = vsub.f32 %v1925_v15, %v2091_v51 }
 0x374   : > { %3495 = vmatmul.mubr.msk.f32.vlgmr.msra.gmra.mrb[12].mxu0 %vm2146_vm2, %v3860_v52  ;;  %v2125_v55 = vsel %vm2073_vm4, %v3860_v52, 0.0 }
 0x375   : > { %3865 = vpow2.f32 %v2114_v53  ;;  %v2116_v57 = vmul.f32 1.442695, %v2103_v54  ;;  %3704 = vmatpush3.bf16.xpose.msk.msra.mxu0 %vm4843_vm3, %v4668_v61  ;;  %2126 = vadd.xlane.f32.xlu1 %v2125_v55 }
 0x376   : > { %3705 = vmatprep.subr.bf16.mxu0 %v4186_v0  ;;  %3516 = vmatprep.mubr.msk.f32.mxu0 %vm4187_vm0, %v4188_v1 }
 0x377   : > { %v3862_v56 = vpop.eup %3861  ;;  %3867 = vpow2.f32 %v2116_v57 }
 0x378   : > { %v2094_v58 = vpop.xlane.xlu0 %2093  ;;  %v2128_v48 = vsel %vm2073_vm4, %v3862_v56, 0.0 }
 0x379   : > { %3700 = vmatpush3.bf16.xpose.msk.msra.mxu1 %vm4843_vm3, %v4675_v3  ;;  %v2104_v59 = vsub.f32 %v1997_v18, %v2094_v58  ;;  %2129 = vadd.xlane.f32.xlu0 %v2128_v48 }
 0x37a   : > { %v2097_v26 = vpop.xlane.xlu1 %2096  ;;  %3709 = vmatprep.subr.bf16.mxu1 %v4186_v0 }
 0x37b   : > { %v3864_v61 = vpop.eup %3863  ;;  %v2118_v62 = vmul.f32 1.442695, %v2104_v59  ;;  %v2105_v29 = vsub.f32 %v2069_v23, %v2097_v26 }
 0x37c   : > { %v2131_v63 = vsel %vm2073_vm4, %v3864_v61, 0.0 }
 0x37d   : > { %3869 = vpow2.f32 %v2118_v62  ;;  %v2120_v2 = vmul.f32 1.442695, %v2105_v29  ;;  %3708 = vmatpush3.bf16.xpose.msk.msra.mxu0 %vm4843_vm3, %v4684_v6  ;;  %2132 = vadd.xlane.f32.xlu1 %v2131_v63 }
 0x37e   : > { %3717 = vmatprep.subr.bf16.mxu0 %v4186_v0 }
 0x37f   : > { %v3866_v3 = vpop.eup %3865  ;;  %3871 = vpow2.f32 %v2120_v2 }
 0x380   : > { %3506 = vmatmul.mubr.msk.f32.vlgmr.msra.gmra.mrb[12].mxu1 %vm2146_vm2, %v3862_v56  ;;  %v2134_v4 = vsel %vm2073_vm4, %v3866_v3, 0.0 }
 0x381   : > { %v3868_v32 = vpop.eup %3867  ;;  %3712 = vmatpush3.bf16.xpose.msk.msra.mxu1 %vm4843_vm3, %v4692_v10  ;;  %2135 = vadd.xlane.f32.xlu0 %v2134_v4 }
 0x382   : > { %v2137_v5 = vsel %vm2073_vm4, %v3868_v32, 0.0  ;;  %3713 = vmatprep.subr.bf16.mxu1 %v4186_v0  ;;  %3527 = vmatprep.mubr.msk.f32.mxu1 %vm4187_vm0, %v4188_v1 }
 0x383   : > { %2138 = vadd.xlane.f32.xlu1 %v2137_v5 }
 0x384   : > { %3517 = vmatmul.mubr.msk.f32.vlgmr.msra.gmra.mrb[14].mxu0 %vm2146_vm2, %v3864_v61 }
 0x385   : > { %3720 = vmatpush3.bf16.xpose.msk.msra.mxu0 %vm4843_vm3, %v4698_v14  ;;  %3538 = vmatprep.mubr.msk.f32.mxu0 %vm4187_vm0, %v4188_v1 }
 0x386   : > { %3721 = vmatprep.subr.bf16.mxu0 %v4186_v0 }
 0x387   : > { %v3870_v6 = vpop.eup %3869 }
 0x388   : > { %v2140_v10 = vsel %vm2073_vm4, %v3870_v6, 0.0 }
 0x389   : > { %v3872_v7 = vpop.eup %3871  ;;  %3716 = vmatpush3.bf16.xpose.msk.msra.mxu1 %vm4843_vm3, %v4706_v19  ;;  %2141 = vadd.xlane.f32.xlu0 %v2140_v10 }
 0x38a   : > { %v2143_v35 = vsel %vm2073_vm4, %v3872_v7, 0.0  ;;  %3725 = vmatprep.subr.bf16.mxu1 %v4186_v0 }
 0x38b   : > { %2144 = vadd.xlane.f32.xlu1 %v2143_v35 }
 0x38d   : > { %3724 = vmatpush3.bf16.xpose.msk.msra.mxu0 %vm4843_vm3, %v4715_v22 }
 0x38e   : > { %3733 = vmatprep.subr.bf16.mxu0 %v4186_v0 }
 0x390   : > { %3528 = vmatmul.mubr.msk.f32.vlgmr.msra.gmra.mrb[14].mxu1 %vm2146_vm2, %v3866_v3 }
 0x391   : > { %3728 = vmatpush3.bf16.xpose.msk.msra.mxu1 %vm4843_vm3, %v4723_v27  ;;  %3549 = vmatprep.mubr.msk.f32.mxu1 %vm4187_vm0, %v4188_v1 }
 0x392   : > { %3729 = vmatprep.subr.bf16.mxu1 %v4186_v0 }
 0x394   : > { %3539 = vmatmul.mubr.msk.f32.vlgmr.msra.gmra.mrb[16].mxu0 %vm2146_vm2, %v3868_v32 }
 0x395   : > { %3736 = vmatpush3.bf16.xpose.msk.msra.mxu0 %vm4843_vm3, %v4730_v33  ;;  %3560 = vmatprep.mubr.msk.f32.mxu0 %vm4187_vm0, %v4188_v1 }
 0x396   : > { %3737 = vmatprep.subr.bf16.mxu0 %v4186_v0 }
 0x399   : > { %3732 = vmatpush3.bf16.xpose.msk.msra.mxu1 %vm4843_vm3, %v4738_v38 }
 0x39d   : > { %3740 = vmatpush3.bf16.xpose.msk.msra.mxu0 %vm4843_vm3, %v4747_v41 }
 0x3a0   : > { %3550 = vmatmul.mubr.msk.f32.vlgmr.msra.gmra.mrb[16].mxu1 %vm2146_vm2, %v3870_v6 }
 0x3a4   : > { %3561 = vmatmul.mubr.msk.f32.vlgmr.msra.gmra.mrb[18].mxu0 %vm2146_vm2, %v3872_v7 }
 0x3fe   : > { %v2124_v14 = vpop.xlane.xlu0 %2123 }
 0x3ff   : > { %3873 = vrcp.f32 %v2124_v14 }
 0x402   : > { %v2127_v19 = vpop.xlane.xlu1 %2126 }
 0x403   : > { %3875 = vrcp.f32 %v2127_v19 }
 0x406   : > { %v2130_v33 = vpop.xlane.xlu0 %2129 }
 0x407   : > { %3877 = vrcp.f32 %v2130_v33 }
 0x409   : > { %v3874_v1 = vpop.eup %3873 }
 0x40a   : > { %v2133_v9 = vpop.xlane.xlu1 %2132 }
 0x40b   : > { %3879 = vrcp.f32 %v2133_v9 }
 0x40d   : > { %v3876_v38 = vpop.eup %3875 }
 0x40e   : > { %v2136_v16 = vpop.xlane.xlu0 %2135 }
 0x40f   : > { %3881 = vrcp.f32 %v2136_v16 }
 0x410   : > { %v2139_v23 = vpop.xlane.xlu1 %2138 }
 0x411   : > { %v3878_v11 = vpop.eup %3877  ;;  %3883 = vrcp.f32 %v2139_v23 }
 0x415   : > { %v3880_v17 = vpop.eup %3879 }
 0x416   : > { %v2142_v31 = vpop.xlane.xlu0 %2141 }
 0x417   : > { %3885 = vrcp.f32 %v2142_v31 }
 0x418   : > { %v2145_v39 = vpop.xlane.xlu1 %2144 }
 0x419   : > { %v3882_v24 = vpop.eup %3881  ;;  %3887 = vrcp.f32 %v2145_v39 }
 0x41b   : > { %v3884_v45 = vpop.eup %3883 }
 0x421   : > { %v3886_v40 = vpop.eup %3885 }
 0x423   : > { %v3888_v46 = vpop.eup %3887 }
 0x443   : > { %v2228_v22 = vpop.f32.mrb[10].mxu1 }
 0x444   : > { %v2835_v0 = vmul.f32 %v3874_v1, %v2228_v22  ;;  %v3485_v27 = vpop.f32.mrb[11].mxu1 }
 0x446   : > { %2844 = vst.msk [vmem:[%s4946_s21] sm:$0x1] %vm2843_vm5, %v2835_v0 }
 0x447   : > { %v2313_v41 = vpop.f32.mrb[12].mxu0 }
 0x448   : > { %v2836_v60 = vmul.f32 %v3876_v38, %v2313_v41  ;;  %v3496_v8 = vpop.f32.mrb[13].mxu0 }
 0x44a   : > { %2845 = vst.msk [vmem:[%s4946_s21 + $0x1] sm:$0x1] %vm2843_vm5, %v2836_v60 }
 0x453   : > { %v2398_v12 = vpop.f32.mrb[12].mxu1 }
 0x454   : > { %v2837_v13 = vmul.f32 %v3878_v11, %v2398_v12  ;;  %v3507_v15 = vpop.f32.mrb[13].mxu1 }
 0x456   : > { %2846 = vst.msk [vmem:[%s4946_s21 + $0x2] sm:$0x1] %vm2843_vm5, %v2837_v13 }
 0x457   : > { %v2483_v18 = vpop.f32.mrb[14].mxu0 }
 0x458   : > { %v2838_v20 = vmul.f32 %v3880_v17, %v2483_v18  ;;  %v3518_v21 = vpop.f32.mrb[15].mxu0 }
 0x45a   : > { %2847 = vst.msk [vmem:[%s4946_s21 + $0x3] sm:$0x1] %vm2843_vm5, %v2838_v20 }
 0x463   : > { %v2568_v25 = vpop.f32.mrb[14].mxu1 }
 0x464   : > { %v2839_v28 = vmul.f32 %v3882_v24, %v2568_v25  ;;  %v3529_v30 = vpop.f32.mrb[15].mxu1 }
 0x466   : > { %2848 = vst.msk [vmem:[%s4946_s21 + $0x4] sm:$0x1] %vm2843_vm5, %v2839_v28 }
 0x467   : > { %v2653_v34 = vpop.f32.mrb[16].mxu0 }
 0x468   : > { %v2840_v36 = vmul.f32 %v3884_v45, %v2653_v34  ;;  %v3540_v37 = vpop.f32.mrb[17].mxu0 }
 0x46a   : > { %2849 = vst.msk [vmem:[%s4946_s21 + $0x5] sm:$0x1] %vm2843_vm5, %v2840_v36 }
 0x473   : > { %v2738_v42 = vpop.f32.mrb[16].mxu1 }
 0x474   : > { %v2841_v43 = vmul.f32 %v3886_v40, %v2738_v42  ;;  %v3551_v44 = vpop.f32.mrb[17].mxu1 }
 0x476   : > { %2850 = vst.msk [vmem:[%s4946_s21 + $0x6] sm:$0x1] %vm2843_vm5, %v2841_v43 }
 0x477   : > { %v2823_v47 = vpop.f32.mrb[18].mxu0 }
 0x478   : > { %v2842_v49 = vmul.f32 %v3888_v46, %v2823_v47  ;;  %v3562_v50 = vpop.f32.mrb[19].mxu0 }
 0x47a   : > { %2851 = vst.msk [vmem:[%s4946_s21 + $0x7] sm:$0x1] %vm2843_vm5, %v2842_v49 }
 0x47b   : > { %4106 = shalt.err (!%p4103_p4)
}
 0x47c   : > { %s4107_s5 = scalar_lea.hbm %s4967_s25, 128  ;;  %s4111_s9 = scalar_lea.hbm %s5092_s24, 256 }
 0x47d   : > { %p4108_p2 = scmp.ne.s32.totalorder %s4967_s25, %s4107_s5  ;;  %p4112_p0 = scmp.lt.u32.totalorder %s4967_s25, %s5092_s24 }
 0x47e   : > { %p4113_p8 = scmp.lt.u32.totalorder %s4111_s9, %s4107_s5  ;;  %p4115_p7 = scmp.lt.u32.totalorder %s4107_s5, %s4967_s25 }
 0x47f   : > { %p4109_p3 = pnand %p4108_p2, %p5093_p10 }
 0x480   : > { %p4114_p13 = por %p4113_p8, %p4112_p0 }
 0x481   : > { %p4110_p11 = pneg %p4109_p3 }
 0x482   : > { %p4116_p12 = por %p4115_p7, %p4114_p13 }
 0x484   : > { %p4117_p1 = pnand %p4116_p12, %p4110_p11 }
 0x486   : > { %4120 = shalt.err (!%p4117_p1)
}
 0x487   : > { %s4191_s18 = smov 16   ;;  %s4192_s20 = smov 1  }
 0x488   : > { %3777 = dma.vmem_to_hbm [thread:$0]  (%p5093_p10), %s4969_s23, 128, %s4967_s25, %s2853_s13, %s4191_s18, %s4191_s18, %s4192_s20  }
 0x489 PF: > { %s5094_s26 = sld [smem:[#allocation21_spill]]  ;;  %s5095_s6 = sld [smem:[#allocation23_spill]] }
 0x48a   : > { %p5097_p6 = scmp.ge.s32.totalorder %s4175_s12, 2 }
 0x48f   : > { %s2881_s21 = sand.u32 1, %s5094_s26   ;;  %p5096_p9 = scmp.ne.s32.totalorder %s5095_s6, 0 }
 0x490   : > { %s2882_s22 = scalar_lea.sflag [#allocation4], %s2881_s21 }
 0x491   : > { %p3803_p5 = pnand %p5097_p6, %p5096_p9 }
 0x493   : > { %4158 = dma.done.wait (!%p3803_p5), %s2882_s22, 128  }
 0x494   : > { %4160 = vsyncadd (!%p3803_p5), %s2882_s22, 4294967168  ;;  %s5098_s12 = sld [smem:[#allocation24_spill]]  ;;  %s5099_s14 = sld [smem:[#allocation22_spill]] }
 0x495   : > { %s5100_s11 = sld [smem:[#allocation26_spill]]  ;;  %s5101_s30 = smov %s4167_s10 }
 0x49a   : > { %p29_p4 = scmp.ge.s32.totalorder %s5098_s12, 4   ;;  %s5102_s10 = smov %s5099_s14 }
 0x49c   :  { %31 = sbr.rel (!%p29_p4) target bundleno = 16 (0x10), region = 150 }
 0x4a3   :  { %2887 = vsyncpa [#allocation3], 1 }
 0x4a4   :  { %2889 = vsyncpa [#allocation3 + $0x1], 1 }
 0x4a5   :  { %2890 = vsyncpa [#allocation6], 1 }
 0x4a6   :  { %2892 = vsyncpa [#allocation6 + $0x1], 1 }
 0x4a7   :  { %2893 = vsyncpa [#allocation9], 1 }
 0x4a8   :  { %2895 = vsyncpa [#allocation9 + $0x1], 1 }
 0x4a9   :  { %2896 = vsyncpa [#allocation12], 1 }
 0x4aa   :  { %2897 = vsyncpa [#allocation4], 1 }
 0x4ab   :  { %2899 = vsyncpa [#allocation4 + $0x1], 1 }

</bundles_post_ra>
